<compile_context>
chip_gen: v7x
topology: tpu7x:2x2x1
jax: 0.10.0
libtpu: 0.0.40
codegen_flags: <defaults>
</compile_context>

<pallas_src>
import numpy as np

import jax
import jax.numpy as jnp
from jax import lax
from jax.experimental import pallas as pl
from jax.experimental.pallas import tpu as pltpu

BF16 = jnp.bfloat16


# ----------------------------------------------------------------------------
# Block-batch choice (review: fold batch into sublanes, 2 grid steps for v7x)
# ----------------------------------------------------------------------------
def choose_block_batch(n_batch, target_grid_steps=2, max_fold=4):
    """Images folded into each grid step.

    target_grid_steps=2 keeps both v7x TensorCores busy; v5e/v6e (1 TC) just run the steps
    back to back.  max_fold=4 bounds the live conv accumulator within the 64-entry vreg file.
    """
    return int(max(1, min(max_fold, pl.cdiv(n_batch, target_grid_steps))))


# ----------------------------------------------------------------------------
# Host-side weight packing (done ONCE, outside the forward path)
# ----------------------------------------------------------------------------
def pack_params(input_chw, conv_params, conv_cfg, fc_params, block_batch):
    """Pack PyTorch-layout params into the matrices the fused kernel consumes.

    Activations inside the kernel are kept as a stacked, lane-dense 2-D slab
    [block_batch * period, W*C] where rows b*period + h (h < Hvalid) are valid.
    """
    C, H, W = input_chw
    B = block_batch
    arrays, meta = [], []

    Cin, Win = C, W
    period, Hvalid = H, H          # stacked-row bookkeeping (per batch element)
    rows = B * period              # stacked activation rows entering the layer

    for (w, b), (k, s, pk, ps) in zip(conv_params, conv_cfg):
        # TODO(synk): conv stride > 1 would need an extra row-selection step in packing.
        assert s == 1, "only conv stride 1 is packed"
        w_np = np.asarray(w, np.float32)            # [Cout, Cin, k, k]
        b_np = np.asarray(b, np.float32)            # [Cout]
        Cout = w_np.shape[0]
        Hc = Hvalid - k + 1
        Wc = Win - k + 1
        # Block-Toeplitz weights: conv = sum_kh act[kh:kh+Rc, :] @ BigW[kh]
        bigw = np.zeros((k, Win * Cin, Wc * Cout), np.float32)
        for kh in range(k):
            for kw in range(k):
                blk = w_np[:, :, kh, kw].T          # [Cin, Cout]
                for wo in range(Wc):
                    wi = wo + kw
                    bigw[kh, wi * Cin:(wi + 1) * Cin, wo * Cout:(wo + 1) * Cout] = blk
        bias_t = np.tile(b_np, Wc).reshape(1, Wc * Cout)
        arrays += [jnp.asarray(bigw, BF16), jnp.asarray(bias_t, jnp.float32)]

        Rc = rows - (k - 1)                         # conv-output rows (stacked)
        lm = dict(k=k, pk=pk, ps=ps, Cout=Cout, Wc=Wc, Rc=Rc)
        if pk is not None:
            Hp = (Hc - pk) // ps + 1
            Wp = (Wc - pk) // ps + 1
            Rm = Rc - (pk - 1)                      # rows after the pk-way row max
            # Row selector: picks row b*period + hp*ps AND compacts the batch stacking.
            P = np.zeros((B * Hp, Rm), np.float32)
            for bb in range(B):
                for hp in range(Hp):
                    P[bb * Hp + hp, bb * period + hp * ps] = 1.0
            # Column selector: picks lane (wp*ps)*Cout + c after the pk-way lane max.
            Lm = (Wc - pk + 1) * Cout
            S = np.zeros((Lm, Wp * Cout), np.float32)
            for wp in range(Wp):
                for c in range(Cout):
                    S[wp * ps * Cout + c, wp * Cout + c] = 1.0
            arrays += [jnp.asarray(P, BF16), jnp.asarray(S, BF16)]
            lm.update(Hp=Hp, Wp=Wp, Rm=Rm, Lm=Lm)
            period, Hvalid, rows = Hp, Hp, B * Hp
            Win, Cin = Wp, Cout
        else:
            Hvalid, rows = Hc, Rc                   # period unchanged
            Win, Cin = Wc, Cout
        meta.append(lm)

    Hf, Wf, Cf = Hvalid, Win, Cin
    n_fc = len(fc_params)
    needs_reorder = n_fc > 0 and not (Hf == 1 and period == 1)
    if needs_reorder:
        # Reorder selector: stacked (b, h) rows -> h-major (h, b) groups for the FC dots.
        R = np.zeros((Hf * B, rows), np.float32)
        for h in range(Hf):
            for bb in range(B):
                R[h * B + bb, bb * period + h] = 1.0
        arrays.append(jnp.asarray(R, BF16))

    for li, (w, b) in enumerate(fc_params):
        w_np = np.asarray(w, np.float32)            # [out, in]
        b_np = np.asarray(b, np.float32)
        if li == 0:
            # PyTorch flattens (c, h, w); our lanes are (w, c) per row-block h.
            perm = np.array([c * Hf * Wf + h * Wf + wq
                             for h in range(Hf) for wq in range(Wf) for c in range(Cf)],
                            dtype=np.int64)
            w1 = w_np[:, perm].T.reshape(Hf, Wf * Cf, -1)    # [Hf, Wf*Cf, F1]
            arrays += [jnp.asarray(w1, BF16), jnp.asarray(b_np.reshape(1, -1), jnp.float32)]
        else:
            arrays += [jnp.asarray(w_np.T, BF16), jnp.asarray(b_np.reshape(1, -1), jnp.float32)]

    out_features = int(fc_params[-1][1].shape[0]) if n_fc else None
    return dict(arrays=arrays, meta=meta, n_fc=n_fc, block_batch=B,
                input_hwc=(H, W, C), final_hwc=(Hf, Wf, Cf),
                period_final=period, rows_final=rows,
                needs_reorder=needs_reorder, out_features=out_features)


# ----------------------------------------------------------------------------
# Fused Pallas kernel (entire network, `block_batch` images per grid program)
# ----------------------------------------------------------------------------
def make_kernel(cfg):
    meta, n_fc, B = cfg["meta"], cfg["n_fc"], cfg["block_batch"]
    Hf, _, _ = cfg["final_hwc"]
    needs_reorder = cfg["needs_reorder"]

    def kernel(*refs):
        idx = 0
        act = refs[idx][0]                           # [B*Hin, Win*Cin], f32, lane-dense
        idx += 1
        for lm in meta:
            k, pk, Rc = lm["k"], lm["pk"], lm["Rc"]
            bigw_ref, bias_ref = refs[idx], refs[idx + 1]
            idx += 2
            # Conv: k row-shifted bf16 matmuls, f32 accumulation on the MXU.
            acc = jnp.dot(act[0:Rc, :].astype(BF16), bigw_ref[0],
                          preferred_element_type=jnp.float32)
            for kh in range(1, k):
                acc = acc + jnp.dot(act[kh:kh + Rc, :].astype(BF16), bigw_ref[kh],
                                    preferred_element_type=jnp.float32)
            y = jnp.maximum(acc + bias_ref[...], 0.0)          # bias + ReLU (f32, VPU)
            if pk is not None:
                p_ref, s_ref = refs[idx], refs[idx + 1]
                idx += 2
                Rm, Lm, Cout = lm["Rm"], lm["Lm"], lm["Cout"]
                # Row pool: pk-way max over sublane-shifted slices (VPU),
                # then ONE row-selection matmul that also compacts the batch stacking.
                m = y[0:Rm, :]
                for j in range(1, pk):
                    m = jnp.maximum(m, y[j:j + Rm, :])
                yh = jnp.dot(p_ref[...], m.astype(BF16),
                             preferred_element_type=jnp.float32)
                # Column pool: pk-way max over lane-shifted slices (VPU/XLU),
                # then ONE column-selection matmul.
                mw = yh[:, 0:Lm]
                for j in range(1, pk):
                    mw = jnp.maximum(mw, yh[:, j * Cout:j * Cout + Lm])
                act = jnp.dot(mw.astype(BF16), s_ref[...],
                              preferred_element_type=jnp.float32)
            else:
                act = y

        out_ref = refs[-1]
        if n_fc:
            if needs_reorder:
                # General Hf>1 (or uncompacted) case: one reorder selector, then
                # per-row-block accumulating dots -- no lane concatenation.
                r_ref = refs[idx]
                idx += 1
                gathered = jnp.dot(r_ref[...], act.astype(BF16),
                                   preferred_element_type=jnp.float32)
                w1_ref, b1_ref = refs[idx], refs[idx + 1]
                idx += 2
                acc_fc = jnp.dot(gathered[0:B, :].astype(BF16), w1_ref[0],
                                 preferred_element_type=jnp.float32)
                for h in range(1, Hf):
                    acc_fc = acc_fc + jnp.dot(
                        gathered[h * B:(h + 1) * B, :].astype(BF16), w1_ref[h],
                        preferred_element_type=jnp.float32)
            else:
                w1_ref, b1_ref = refs[idx], refs[idx + 1]
                idx += 2
                acc_fc = jnp.dot(act.astype(BF16), w1_ref[0],
                                 preferred_element_type=jnp.float32)
            flat = jnp.maximum(acc_fc + b1_ref[...], 0.0)
            for _ in range(1, n_fc):
                w_ref, b_ref = refs[idx], refs[idx + 1]
                idx += 2
                flat = jnp.maximum(
                    jnp.dot(flat.astype(BF16), w_ref[...],
                            preferred_element_type=jnp.float32) + b_ref[...], 0.0)
            assert idx == len(refs) - 1
            out_ref[0] = flat                        # [B, out_features], f32
        else:
            assert idx == len(refs) - 1
            out_ref[0] = act                         # stacked [rows_final, Wf*Cf], f32

    return kernel


# ----------------------------------------------------------------------------
# Wrapper
# ----------------------------------------------------------------------------
def cnn_encoder_forward(x_nchw, cfg):
    arrays, n_fc, B = cfg["arrays"], cfg["n_fc"], cfg["block_batch"]
    H, W, C = cfg["input_hwc"]
    Hf, Wf, Cf = cfg["final_hwc"]
    N = x_nchw.shape[0]
    npad = int(pl.cdiv(N, B)) * B
    nblk = npad // B

    # NCHW -> lane-dense [N, H, W*C] (channel-fastest), pad batch, stack B rows per block.
    x = jnp.transpose(x_nchw, (0, 2, 3, 1)).reshape(N, H, W * C)
    if npad != N:
        x = jnp.pad(x, ((0, npad - N), (0, 0), (0, 0)))
    x = x.reshape(nblk, B * H, W * C)

    in_specs = [pl.BlockSpec((1, B * H, W * C), lambda n: (n, 0, 0))]
    # Constant block index -> weights DMA'd once, never re-fetched across grid steps.
    for a in arrays:
        in_specs.append(pl.BlockSpec(a.shape, lambda n, _nd=len(a.shape): (0,) * _nd))

    if n_fc:
        F = cfg["out_features"]
        out_shape = jax.ShapeDtypeStruct((nblk, B, F), jnp.float32)
        out_spec = pl.BlockSpec((1, B, F), lambda n: (n, 0, 0))
    else:
        rows_f = cfg["rows_final"]
        out_shape = jax.ShapeDtypeStruct((nblk, rows_f, Wf * Cf), jnp.float32)
        out_spec = pl.BlockSpec((1, rows_f, Wf * Cf), lambda n: (n, 0, 0))

    out = pl.pallas_call(
        make_kernel(cfg),
        out_shape=out_shape,
        grid=(nblk,),
        in_specs=in_specs,
        out_specs=out_spec,
        compiler_params=pltpu.CompilerParams(
            dimension_semantics=("parallel",),       # 2 grid steps -> one per v7x TC
            vmem_limit_bytes=8 * 1024 * 1024),       # real footprint ~1 MiB; modest headroom
    )(x, *arrays)

    if n_fc:
        return out.reshape(npad, cfg["out_features"])[:N]
    # No-FC case: unpack the stacked rows back to NCHW.
    period = cfg["period_final"]
    rows_f = cfg["rows_final"]
    pad_rows = B * period - rows_f
    if pad_rows:
        out = jnp.pad(out, ((0, 0), (0, pad_rows), (0, 0)))
    out = out.reshape(npad, period, Wf, Cf)[:N, :Hf]
    return jnp.transpose(out, (0, 3, 1, 2))


# ----------------------------------------------------------------------------
# Pure-JAX reference (correctness check)
# ----------------------------------------------------------------------------
def reference_forward(x_nchw, conv_params, conv_cfg, fc_params):
    x = jnp.transpose(x_nchw, (0, 2, 3, 1))  # NHWC
    for (w, b), (k, s, pk, ps) in zip(conv_params, conv_cfg):
        w_hwio = jnp.transpose(w, (2, 3, 1, 0))
        x = lax.conv_general_dilated(
            x, w_hwio, window_strides=(s, s), padding="VALID",
            dimension_numbers=("NHWC", "HWIO", "NHWC"))
        x = jnp.maximum(x + b, 0.0)
        if pk is not None:
            x = lax.reduce_window(x, -jnp.inf, lax.max,
                                  (1, pk, pk, 1), (1, ps, ps, 1), "VALID")
    if fc_params:
        flat = jnp.transpose(x, (0, 3, 1, 2)).reshape(x.shape[0], -1)
        for w, b in fc_params:
            flat = jnp.maximum(flat @ w.T + b, 0.0)
        return flat
    return jnp.transpose(x, (0, 3, 1, 2))


# ----------------------------------------------------------------------------
# Main
# ----------------------------------------------------------------------------
if __name__ == "__main__":
    # Small config consistent with CNNEncoder(__init__):
    #   input_shape=(4, 24, 24), conv_out_channels=(8, 16, 16), kernel 3, stride 1,
    #   pool 2/2, fc_out_features=(32,).  24x24 spatial is the smallest clean fit for
    #   three conv+pool stages.
    batch = 4
    in_c, in_h, in_w = 4, 24, 24
    conv_out_channels = (8, 16, 16)
    conv_cfg = [(3, 1, 2, 2), (3, 1, 2, 2), (3, 1, 2, 2)]  # (k, stride, pool_k, pool_s)
    fc_out_features = (32,)

    key = jax.random.PRNGKey(0)
    key, xkey = jax.random.split(key)
    x = jax.random.normal(xkey, (batch, in_c, in_h, in_w), jnp.float32)

    # Deterministic synthetic parameters (shapes match nn.Conv2d / nn.Linear).
    conv_params = []
    c_prev, h, w = in_c, in_h, in_w
    for c_out, (k, s, pk, ps) in zip(conv_out_channels, conv_cfg):
        key, wk, bk = jax.random.split(key, 3)
        fan_in = c_prev * k * k
        wgt = jax.random.normal(wk, (c_out, c_prev, k, k), jnp.float32) / jnp.sqrt(fan_in)
        bia = jax.random.normal(bk, (c_out,), jnp.float32) * 0.05
        conv_params.append((wgt, bia))
        h, w = (h - k) // s + 1, (w - k) // s + 1
        if pk is not None:
            h, w = (h - pk) // ps + 1, (w - pk) // ps + 1
        c_prev = c_out

    fc_params = []
    feat = c_prev * h * w
    for f_out in fc_out_features:
        key, wk, bk = jax.random.split(key, 3)
        wgt = jax.random.normal(wk, (f_out, feat), jnp.float32) / jnp.sqrt(feat)
        bia = jax.random.normal(bk, (f_out,), jnp.float32) * 0.05
        fc_params.append((wgt, bia))
        feat = f_out

    # Pack weights ONCE (outside the forward path).
    block_batch = choose_block_batch(batch)          # -> 2: grid of 2 steps
    packed = pack_params((in_c, in_h, in_w), conv_params, conv_cfg, fc_params, block_batch)

    out = jax.block_until_ready(cnn_encoder_forward(x, packed))
    ref = jax.block_until_ready(reference_forward(x, conv_params, conv_cfg, fc_params))

    assert out.shape == (batch, fc_out_features[-1]), out.shape
    # bf16 matmul operands (single-pass MXU) => a few more bits of rounding than the f32
    # reference; values are O(1), so 5e-2 abs/rel comfortably covers it.
    max_err = float(jnp.max(jnp.abs(out - ref)))
    assert jnp.allclose(out, ref, rtol=5e-2, atol=5e-2), max_err

    print("KERNEL_OK")
</pallas_src>

<mosaic_0001>
module attributes {stable_mosaic.version = 11 : i64} {
  func.func @kernel(%arg0: i32, %arg1: memref<1x48x96xf32, #tpu.memory_space<vmem>>, %arg2: memref<3x96x176xbf16, #tpu.memory_space<vmem>>, %arg3: memref<1x176xf32, #tpu.memory_space<vmem>>, %arg4: memref<22x45xbf16, #tpu.memory_space<vmem>>, %arg5: memref<168x88xbf16, #tpu.memory_space<vmem>>, %arg6: memref<3x88x144xbf16, #tpu.memory_space<vmem>>, %arg7: memref<1x144xf32, #tpu.memory_space<vmem>>, %arg8: memref<8x19xbf16, #tpu.memory_space<vmem>>, %arg9: memref<128x64xbf16, #tpu.memory_space<vmem>>, %arg10: memref<3x64x32xbf16, #tpu.memory_space<vmem>>, %arg11: memref<1x32xf32, #tpu.memory_space<vmem>>, %arg12: memref<2x5xbf16, #tpu.memory_space<vmem>>, %arg13: memref<16x16xbf16, #tpu.memory_space<vmem>>, %arg14: memref<1x16x32xbf16, #tpu.memory_space<vmem>>, %arg15: memref<1x32xf32, #tpu.memory_space<vmem>>, %arg16: memref<1x2x32xf32, #tpu.memory_space<vmem>>) attributes {dimension_semantics = [#tpu.dimension_semantics<parallel>], iteration_bounds = array<i64: 2>, scalar_prefetch = 0 : i64, scratch_operands = 0 : i64, tpu.core_type = #tpu.core_type<tc>, window_params = [{transform_indices = @transform_0, window_bounds = array<i64: 1, 48, 96>}, {pipeline_mode = #tpu.pipeline_mode<synchronous>, transform_indices = @transform_1, window_bounds = array<i64: 3, 96, 176>}, {pipeline_mode = #tpu.pipeline_mode<synchronous>, transform_indices = @transform_2, window_bounds = array<i64: 1, 176>}, {pipeline_mode = #tpu.pipeline_mode<synchronous>, transform_indices = @transform_3, window_bounds = array<i64: 22, 45>}, {pipeline_mode = #tpu.pipeline_mode<synchronous>, transform_indices = @transform_4, window_bounds = array<i64: 168, 88>}, {pipeline_mode = #tpu.pipeline_mode<synchronous>, transform_indices = @transform_5, window_bounds = array<i64: 3, 88, 144>}, {pipeline_mode = #tpu.pipeline_mode<synchronous>, transform_indices = @transform_6, window_bounds = array<i64: 1, 144>}, {pipeline_mode = #tpu.pipeline_mode<synchronous>, transform_indices = @transform_7, window_bounds = array<i64: 8, 19>}, {pipeline_mode = #tpu.pipeline_mode<synchronous>, transform_indices = @transform_8, window_bounds = array<i64: 128, 64>}, {pipeline_mode = #tpu.pipeline_mode<synchronous>, transform_indices = @transform_9, window_bounds = array<i64: 3, 64, 32>}, {pipeline_mode = #tpu.pipeline_mode<synchronous>, transform_indices = @transform_10, window_bounds = array<i64: 1, 32>}, {pipeline_mode = #tpu.pipeline_mode<synchronous>, transform_indices = @transform_11, window_bounds = array<i64: 2, 5>}, {pipeline_mode = #tpu.pipeline_mode<synchronous>, transform_indices = @transform_12, window_bounds = array<i64: 16, 16>}, {pipeline_mode = #tpu.pipeline_mode<synchronous>, transform_indices = @transform_13, window_bounds = array<i64: 1, 16, 32>}, {pipeline_mode = #tpu.pipeline_mode<synchronous>, transform_indices = @transform_14, window_bounds = array<i64: 1, 32>}, {transform_indices = @transform_15, window_bounds = array<i64: 1, 2, 32>}]} {
    %c0 = arith.constant 0 : index
    %c0_0 = arith.constant 0 : index
    %c0_1 = arith.constant 0 : index
    %0 = vector.load %arg1[%c0, %c0_0, %c0_1] : memref<1x48x96xf32, #tpu.memory_space<vmem>>, vector<1x48x96xf32>
    %1 = vector.shape_cast %0 : vector<1x48x96xf32> to vector<48x96xf32>
    %2 = vector.extract_strided_slice %1 {offsets = [0, 0], sizes = [46, 96], strides = [1, 1]} : vector<48x96xf32> to vector<46x96xf32>
    %3 = arith.truncf %2 : vector<46x96xf32> to vector<46x96xbf16>
    %c0_2 = arith.constant 0 : index
    %c0_3 = arith.constant 0 : index
    %c0_4 = arith.constant 0 : index
    %4 = vector.load %arg2[%c0_2, %c0_3, %c0_4] : memref<3x96x176xbf16, #tpu.memory_space<vmem>>, vector<1x96x176xbf16>
    %5 = vector.shape_cast %4 : vector<1x96x176xbf16> to vector<96x176xbf16>
    %cst = arith.constant dense<0.000000e+00> : vector<46x176xf32>
    %6 = tpu.matmul %3, %5, %cst {dimension_numbers = #tpu.dot_dimension_numbers<[1], [0], [0], [1], [0, 0, 1, 1], [], []>} : vector<46x96xbf16>, vector<96x176xbf16>, vector<46x176xf32> -> vector<46x176xf32>
    %7 = vector.extract_strided_slice %1 {offsets = [1, 0], sizes = [46, 96], strides = [1, 1]} : vector<48x96xf32> to vector<46x96xf32>
    %8 = arith.truncf %7 : vector<46x96xf32> to vector<46x96xbf16>
    %c1 = arith.constant 1 : index
    %c0_5 = arith.constant 0 : index
    %c0_6 = arith.constant 0 : index
    %9 = vector.load %arg2[%c1, %c0_5, %c0_6] : memref<3x96x176xbf16, #tpu.memory_space<vmem>>, vector<1x96x176xbf16>
    %10 = vector.shape_cast %9 : vector<1x96x176xbf16> to vector<96x176xbf16>
    %cst_7 = arith.constant dense<0.000000e+00> : vector<46x176xf32>
    %11 = tpu.matmul %8, %10, %cst_7 {dimension_numbers = #tpu.dot_dimension_numbers<[1], [0], [0], [1], [0, 0, 1, 1], [], []>} : vector<46x96xbf16>, vector<96x176xbf16>, vector<46x176xf32> -> vector<46x176xf32>
    %12 = arith.addf %6, %11 : vector<46x176xf32>
    %13 = vector.extract_strided_slice %1 {offsets = [2, 0], sizes = [46, 96], strides = [1, 1]} : vector<48x96xf32> to vector<46x96xf32>
    %14 = arith.truncf %13 : vector<46x96xf32> to vector<46x96xbf16>
    %c2 = arith.constant 2 : index
    %c0_8 = arith.constant 0 : index
    %c0_9 = arith.constant 0 : index
    %15 = vector.load %arg2[%c2, %c0_8, %c0_9] : memref<3x96x176xbf16, #tpu.memory_space<vmem>>, vector<1x96x176xbf16>
    %16 = vector.shape_cast %15 : vector<1x96x176xbf16> to vector<96x176xbf16>
    %cst_10 = arith.constant dense<0.000000e+00> : vector<46x176xf32>
    %17 = tpu.matmul %14, %16, %cst_10 {dimension_numbers = #tpu.dot_dimension_numbers<[1], [0], [0], [1], [0, 0, 1, 1], [], []>} : vector<46x96xbf16>, vector<96x176xbf16>, vector<46x176xf32> -> vector<46x176xf32>
    %18 = arith.addf %12, %17 : vector<46x176xf32>
    %c0_11 = arith.constant 0 : index
    %c0_12 = arith.constant 0 : index
    %19 = vector.load %arg3[%c0_11, %c0_12] : memref<1x176xf32, #tpu.memory_space<vmem>>, vector<1x176xf32>
    %20 = vector.broadcast %19 : vector<1x176xf32> to vector<46x176xf32>
    %21 = arith.addf %18, %20 : vector<46x176xf32>
    %cst_13 = arith.constant 0.000000e+00 : f32
    %22 = vector.broadcast %cst_13 : f32 to vector<46x176xf32>
    %23 = arith.maximumf %21, %22 : vector<46x176xf32>
    %24 = vector.extract_strided_slice %23 {offsets = [0, 0], sizes = [45, 176], strides = [1, 1]} : vector<46x176xf32> to vector<45x176xf32>
    %25 = vector.extract_strided_slice %23 {offsets = [1, 0], sizes = [45, 176], strides = [1, 1]} : vector<46x176xf32> to vector<45x176xf32>
    %26 = arith.maximumf %24, %25 : vector<45x176xf32>
    %c0_14 = arith.constant 0 : index
    %c0_15 = arith.constant 0 : index
    %27 = vector.load %arg4[%c0_14, %c0_15] : memref<22x45xbf16, #tpu.memory_space<vmem>>, vector<22x45xbf16>
    %28 = arith.truncf %26 : vector<45x176xf32> to vector<45x176xbf16>
    %cst_16 = arith.constant dense<0.000000e+00> : vector<22x176xf32>
    %29 = tpu.matmul %27, %28, %cst_16 {dimension_numbers = #tpu.dot_dimension_numbers<[1], [0], [0], [1], [0, 0, 1, 1], [], []>} : vector<22x45xbf16>, vector<45x176xbf16>, vector<22x176xf32> -> vector<22x176xf32>
    %30 = vector.extract_strided_slice %29 {offsets = [0, 0], sizes = [22, 168], strides = [1, 1]} : vector<22x176xf32> to vector<22x168xf32>
    %31 = vector.extract_strided_slice %29 {offsets = [0, 8], sizes = [22, 168], strides = [1, 1]} : vector<22x176xf32> to vector<22x168xf32>
    %32 = arith.maximumf %30, %31 : vector<22x168xf32>
    %33 = arith.truncf %32 : vector<22x168xf32> to vector<22x168xbf16>
    %c0_17 = arith.constant 0 : index
    %c0_18 = arith.constant 0 : index
    %34 = vector.load %arg5[%c0_17, %c0_18] : memref<168x88xbf16, #tpu.memory_space<vmem>>, vector<168x88xbf16>
    %cst_19 = arith.constant dense<0.000000e+00> : vector<22x88xf32>
    %35 = tpu.matmul %33, %34, %cst_19 {dimension_numbers = #tpu.dot_dimension_numbers<[1], [0], [0], [1], [0, 0, 1, 1], [], []>} : vector<22x168xbf16>, vector<168x88xbf16>, vector<22x88xf32> -> vector<22x88xf32>
    %36 = vector.extract_strided_slice %35 {offsets = [0, 0], sizes = [20, 88], strides = [1, 1]} : vector<22x88xf32> to vector<20x88xf32>
    %37 = arith.truncf %36 : vector<20x88xf32> to vector<20x88xbf16>
    %c0_20 = arith.constant 0 : index
    %c0_21 = arith.constant 0 : index
    %c0_22 = arith.constant 0 : index
    %38 = vector.load %arg6[%c0_20, %c0_21, %c0_22] : memref<3x88x144xbf16, #tpu.memory_space<vmem>>, vector<1x88x144xbf16>
    %39 = vector.shape_cast %38 : vector<1x88x144xbf16> to vector<88x144xbf16>
    %cst_23 = arith.constant dense<0.000000e+00> : vector<20x144xf32>
    %40 = tpu.matmul %37, %39, %cst_23 {dimension_numbers = #tpu.dot_dimension_numbers<[1], [0], [0], [1], [0, 0, 1, 1], [], []>} : vector<20x88xbf16>, vector<88x144xbf16>, vector<20x144xf32> -> vector<20x144xf32>
    %41 = vector.extract_strided_slice %35 {offsets = [1, 0], sizes = [20, 88], strides = [1, 1]} : vector<22x88xf32> to vector<20x88xf32>
    %42 = arith.truncf %41 : vector<20x88xf32> to vector<20x88xbf16>
    %c1_24 = arith.constant 1 : index
    %c0_25 = arith.constant 0 : index
    %c0_26 = arith.constant 0 : index
    %43 = vector.load %arg6[%c1_24, %c0_25, %c0_26] : memref<3x88x144xbf16, #tpu.memory_space<vmem>>, vector<1x88x144xbf16>
    %44 = vector.shape_cast %43 : vector<1x88x144xbf16> to vector<88x144xbf16>
    %cst_27 = arith.constant dense<0.000000e+00> : vector<20x144xf32>
    %45 = tpu.matmul %42, %44, %cst_27 {dimension_numbers = #tpu.dot_dimension_numbers<[1], [0], [0], [1], [0, 0, 1, 1], [], []>} : vector<20x88xbf16>, vector<88x144xbf16>, vector<20x144xf32> -> vector<20x144xf32>
    %46 = arith.addf %40, %45 : vector<20x144xf32>
    %47 = vector.extract_strided_slice %35 {offsets = [2, 0], sizes = [20, 88], strides = [1, 1]} : vector<22x88xf32> to vector<20x88xf32>
    %48 = arith.truncf %47 : vector<20x88xf32> to vector<20x88xbf16>
    %c2_28 = arith.constant 2 : index
    %c0_29 = arith.constant 0 : index
    %c0_30 = arith.constant 0 : index
    %49 = vector.load %arg6[%c2_28, %c0_29, %c0_30] : memref<3x88x144xbf16, #tpu.memory_space<vmem>>, vector<1x88x144xbf16>
    %50 = vector.shape_cast %49 : vector<1x88x144xbf16> to vector<88x144xbf16>
    %cst_31 = arith.constant dense<0.000000e+00> : vector<20x144xf32>
    %51 = tpu.matmul %48, %50, %cst_31 {dimension_numbers = #tpu.dot_dimension_numbers<[1], [0], [0], [1], [0, 0, 1, 1], [], []>} : vector<20x88xbf16>, vector<88x144xbf16>, vector<20x144xf32> -> vector<20x144xf32>
    %52 = arith.addf %46, %51 : vector<20x144xf32>
    %c0_32 = arith.constant 0 : index
    %c0_33 = arith.constant 0 : index
    %53 = vector.load %arg7[%c0_32, %c0_33] : memref<1x144xf32, #tpu.memory_space<vmem>>, vector<1x144xf32>
    %54 = vector.broadcast %53 : vector<1x144xf32> to vector<20x144xf32>
    %55 = arith.addf %52, %54 : vector<20x144xf32>
    %cst_34 = arith.constant 0.000000e+00 : f32
    %56 = vector.broadcast %cst_34 : f32 to vector<20x144xf32>
    %57 = arith.maximumf %55, %56 : vector<20x144xf32>
    %58 = vector.extract_strided_slice %57 {offsets = [0, 0], sizes = [19, 144], strides = [1, 1]} : vector<20x144xf32> to vector<19x144xf32>
    %59 = vector.extract_strided_slice %57 {offsets = [1, 0], sizes = [19, 144], strides = [1, 1]} : vector<20x144xf32> to vector<19x144xf32>
    %60 = arith.maximumf %58, %59 : vector<19x144xf32>
    %c0_35 = arith.constant 0 : index
    %c0_36 = arith.constant 0 : index
    %61 = vector.load %arg8[%c0_35, %c0_36] : memref<8x19xbf16, #tpu.memory_space<vmem>>, vector<8x19xbf16>
    %62 = arith.truncf %60 : vector<19x144xf32> to vector<19x144xbf16>
    %cst_37 = arith.constant dense<0.000000e+00> : vector<8x144xf32>
    %63 = tpu.matmul %61, %62, %cst_37 {dimension_numbers = #tpu.dot_dimension_numbers<[1], [0], [0], [1], [0, 0, 1, 1], [], []>} : vector<8x19xbf16>, vector<19x144xbf16>, vector<8x144xf32> -> vector<8x144xf32>
    %64 = vector.extract_strided_slice %63 {offsets = [0, 0], sizes = [8, 128], strides = [1, 1]} : vector<8x144xf32> to vector<8x128xf32>
    %65 = vector.extract_strided_slice %63 {offsets = [0, 16], sizes = [8, 128], strides = [1, 1]} : vector<8x144xf32> to vector<8x128xf32>
    %66 = arith.maximumf %64, %65 : vector<8x128xf32>
    %67 = arith.truncf %66 : vector<8x128xf32> to vector<8x128xbf16>
    %c0_38 = arith.constant 0 : index
    %c0_39 = arith.constant 0 : index
    %68 = vector.load %arg9[%c0_38, %c0_39] : memref<128x64xbf16, #tpu.memory_space<vmem>>, vector<128x64xbf16>
    %cst_40 = arith.constant dense<0.000000e+00> : vector<8x64xf32>
    %69 = tpu.matmul %67, %68, %cst_40 {dimension_numbers = #tpu.dot_dimension_numbers<[1], [0], [0], [1], [0, 0, 1, 1], [], []>} : vector<8x128xbf16>, vector<128x64xbf16>, vector<8x64xf32> -> vector<8x64xf32>
    %70 = vector.extract_strided_slice %69 {offsets = [0, 0], sizes = [6, 64], strides = [1, 1]} : vector<8x64xf32> to vector<6x64xf32>
    %71 = arith.truncf %70 : vector<6x64xf32> to vector<6x64xbf16>
    %c0_41 = arith.constant 0 : index
    %c0_42 = arith.constant 0 : index
    %c0_43 = arith.constant 0 : index
    %72 = vector.load %arg10[%c0_41, %c0_42, %c0_43] : memref<3x64x32xbf16, #tpu.memory_space<vmem>>, vector<1x64x32xbf16>
    %73 = vector.shape_cast %72 : vector<1x64x32xbf16> to vector<64x32xbf16>
    %cst_44 = arith.constant dense<0.000000e+00> : vector<6x32xf32>
    %74 = tpu.matmul %71, %73, %cst_44 {dimension_numbers = #tpu.dot_dimension_numbers<[1], [0], [0], [1], [0, 0, 1, 1], [], []>} : vector<6x64xbf16>, vector<64x32xbf16>, vector<6x32xf32> -> vector<6x32xf32>
    %75 = vector.extract_strided_slice %69 {offsets = [1, 0], sizes = [6, 64], strides = [1, 1]} : vector<8x64xf32> to vector<6x64xf32>
    %76 = arith.truncf %75 : vector<6x64xf32> to vector<6x64xbf16>
    %c1_45 = arith.constant 1 : index
    %c0_46 = arith.constant 0 : index
    %c0_47 = arith.constant 0 : index
    %77 = vector.load %arg10[%c1_45, %c0_46, %c0_47] : memref<3x64x32xbf16, #tpu.memory_space<vmem>>, vector<1x64x32xbf16>
    %78 = vector.shape_cast %77 : vector<1x64x32xbf16> to vector<64x32xbf16>
    %cst_48 = arith.constant dense<0.000000e+00> : vector<6x32xf32>
    %79 = tpu.matmul %76, %78, %cst_48 {dimension_numbers = #tpu.dot_dimension_numbers<[1], [0], [0], [1], [0, 0, 1, 1], [], []>} : vector<6x64xbf16>, vector<64x32xbf16>, vector<6x32xf32> -> vector<6x32xf32>
    %80 = arith.addf %74, %79 : vector<6x32xf32>
    %81 = vector.extract_strided_slice %69 {offsets = [2, 0], sizes = [6, 64], strides = [1, 1]} : vector<8x64xf32> to vector<6x64xf32>
    %82 = arith.truncf %81 : vector<6x64xf32> to vector<6x64xbf16>
    %c2_49 = arith.constant 2 : index
    %c0_50 = arith.constant 0 : index
    %c0_51 = arith.constant 0 : index
    %83 = vector.load %arg10[%c2_49, %c0_50, %c0_51] : memref<3x64x32xbf16, #tpu.memory_space<vmem>>, vector<1x64x32xbf16>
    %84 = vector.shape_cast %83 : vector<1x64x32xbf16> to vector<64x32xbf16>
    %cst_52 = arith.constant dense<0.000000e+00> : vector<6x32xf32>
    %85 = tpu.matmul %82, %84, %cst_52 {dimension_numbers = #tpu.dot_dimension_numbers<[1], [0], [0], [1], [0, 0, 1, 1], [], []>} : vector<6x64xbf16>, vector<64x32xbf16>, vector<6x32xf32> -> vector<6x32xf32>
    %86 = arith.addf %80, %85 : vector<6x32xf32>
    %c0_53 = arith.constant 0 : index
    %c0_54 = arith.constant 0 : index
    %87 = vector.load %arg11[%c0_53, %c0_54] : memref<1x32xf32, #tpu.memory_space<vmem>>, vector<1x32xf32>
    %88 = vector.broadcast %87 : vector<1x32xf32> to vector<6x32xf32>
    %89 = arith.addf %86, %88 : vector<6x32xf32>
    %cst_55 = arith.constant 0.000000e+00 : f32
    %90 = vector.broadcast %cst_55 : f32 to vector<6x32xf32>
    %91 = arith.maximumf %89, %90 : vector<6x32xf32>
    %92 = vector.extract_strided_slice %91 {offsets = [0, 0], sizes = [5, 32], strides = [1, 1]} : vector<6x32xf32> to vector<5x32xf32>
    %93 = vector.extract_strided_slice %91 {offsets = [1, 0], sizes = [5, 32], strides = [1, 1]} : vector<6x32xf32> to vector<5x32xf32>
    %94 = arith.maximumf %92, %93 : vector<5x32xf32>
    %c0_56 = arith.constant 0 : index
    %c0_57 = arith.constant 0 : index
    %95 = vector.load %arg12[%c0_56, %c0_57] : memref<2x5xbf16, #tpu.memory_space<vmem>>, vector<2x5xbf16>
    %96 = arith.truncf %94 : vector<5x32xf32> to vector<5x32xbf16>
    %cst_58 = arith.constant dense<0.000000e+00> : vector<2x32xf32>
    %97 = tpu.matmul %95, %96, %cst_58 {dimension_numbers = #tpu.dot_dimension_numbers<[1], [0], [0], [1], [0, 0, 1, 1], [], []>} : vector<2x5xbf16>, vector<5x32xbf16>, vector<2x32xf32> -> vector<2x32xf32>
    %98 = vector.extract_strided_slice %97 {offsets = [0, 0], sizes = [2, 16], strides = [1, 1]} : vector<2x32xf32> to vector<2x16xf32>
    %99 = vector.extract_strided_slice %97 {offsets = [0, 16], sizes = [2, 16], strides = [1, 1]} : vector<2x32xf32> to vector<2x16xf32>
    %100 = arith.maximumf %98, %99 : vector<2x16xf32>
    %101 = arith.truncf %100 : vector<2x16xf32> to vector<2x16xbf16>
    %c0_59 = arith.constant 0 : index
    %c0_60 = arith.constant 0 : index
    %102 = vector.load %arg13[%c0_59, %c0_60] : memref<16x16xbf16, #tpu.memory_space<vmem>>, vector<16x16xbf16>
    %cst_61 = arith.constant dense<0.000000e+00> : vector<2x16xf32>
    %103 = tpu.matmul %101, %102, %cst_61 {dimension_numbers = #tpu.dot_dimension_numbers<[1], [0], [0], [1], [0, 0, 1, 1], [], []>} : vector<2x16xbf16>, vector<16x16xbf16>, vector<2x16xf32> -> vector<2x16xf32>
    %104 = arith.truncf %103 : vector<2x16xf32> to vector<2x16xbf16>
    %c0_62 = arith.constant 0 : index
    %c0_63 = arith.constant 0 : index
    %c0_64 = arith.constant 0 : index
    %105 = vector.load %arg14[%c0_62, %c0_63, %c0_64] : memref<1x16x32xbf16, #tpu.memory_space<vmem>>, vector<1x16x32xbf16>
    %106 = vector.shape_cast %105 : vector<1x16x32xbf16> to vector<16x32xbf16>
    %cst_65 = arith.constant dense<0.000000e+00> : vector<2x32xf32>
    %107 = tpu.matmul %104, %106, %cst_65 {dimension_numbers = #tpu.dot_dimension_numbers<[1], [0], [0], [1], [0, 0, 1, 1], [], []>} : vector<2x16xbf16>, vector<16x32xbf16>, vector<2x32xf32> -> vector<2x32xf32>
    %c0_66 = arith.constant 0 : index
    %c0_67 = arith.constant 0 : index
    %108 = vector.load %arg15[%c0_66, %c0_67] : memref<1x32xf32, #tpu.memory_space<vmem>>, vector<1x32xf32>
    %109 = vector.broadcast %108 : vector<1x32xf32> to vector<2x32xf32>
    %110 = arith.addf %107, %109 : vector<2x32xf32>
    %cst_68 = arith.constant 0.000000e+00 : f32
    %111 = vector.broadcast %cst_68 : f32 to vector<2x32xf32>
    %112 = arith.maximumf %110, %111 : vector<2x32xf32>
    %c0_69 = arith.constant 0 : index
    %c0_70 = arith.constant 0 : index
    %c0_71 = arith.constant 0 : index
    %113 = vector.load %arg16[%c0_69, %c0_70, %c0_71] : memref<1x2x32xf32, #tpu.memory_space<vmem>>, vector<1x2x32xf32>
    %114 = vector.shape_cast %113 : vector<1x2x32xf32> to vector<2x32xf32>
    %115 = vector.shape_cast %112 : vector<2x32xf32> to vector<1x2x32xf32>
    tpu.vector_store %arg16[%c0_69, %c0_70, %c0_71], %115 {strides = array<i32>} : memref<1x2x32xf32, #tpu.memory_space<vmem>>, vector<1x2x32xf32>,
    return
  }
  func.func @transform_0(%arg0: i32) -> (i32, i32, i32) {
    %c0_i32 = arith.constant 0 : i32
    %c0_i32_0 = arith.constant 0 : i32
    %c0_i32_1 = arith.constant 0 : i32
    return %arg0, %c0_i32, %c0_i32_0 : i32, i32, i32
  }
  func.func @transform_1(%arg0: i32) -> (i32, i32, i32) {
    %c0_i32 = arith.constant 0 : i32
    %c0_i32_0 = arith.constant 0 : i32
    %c0_i32_1 = arith.constant 0 : i32
    %c0_i32_2 = arith.constant 0 : i32
    return %c0_i32, %c0_i32_0, %c0_i32_1 : i32, i32, i32
  }
  func.func @transform_2(%arg0: i32) -> (i32, i32) {
    %c0_i32 = arith.constant 0 : i32
    %c0_i32_0 = arith.constant 0 : i32
    %c0_i32_1 = arith.constant 0 : i32
    return %c0_i32, %c0_i32_0 : i32, i32
  }
  func.func @transform_3(%arg0: i32) -> (i32, i32) {
    %c0_i32 = arith.constant 0 : i32
    %c0_i32_0 = arith.constant 0 : i32
    %c0_i32_1 = arith.constant 0 : i32
    return %c0_i32, %c0_i32_0 : i32, i32
  }
  func.func @transform_4(%arg0: i32) -> (i32, i32) {
    %c0_i32 = arith.constant 0 : i32
    %c0_i32_0 = arith.constant 0 : i32
    %c0_i32_1 = arith.constant 0 : i32
    return %c0_i32, %c0_i32_0 : i32, i32
  }
  func.func @transform_5(%arg0: i32) -> (i32, i32, i32) {
    %c0_i32 = arith.constant 0 : i32
    %c0_i32_0 = arith.constant 0 : i32
    %c0_i32_1 = arith.constant 0 : i32
    %c0_i32_2 = arith.constant 0 : i32
    return %c0_i32, %c0_i32_0, %c0_i32_1 : i32, i32, i32
  }
  func.func @transform_6(%arg0: i32) -> (i32, i32) {
    %c0_i32 = arith.constant 0 : i32
    %c0_i32_0 = arith.constant 0 : i32
    %c0_i32_1 = arith.constant 0 : i32
    return %c0_i32, %c0_i32_0 : i32, i32
  }
  func.func @transform_7(%arg0: i32) -> (i32, i32) {
    %c0_i32 = arith.constant 0 : i32
    %c0_i32_0 = arith.constant 0 : i32
    %c0_i32_1 = arith.constant 0 : i32
    return %c0_i32, %c0_i32_0 : i32, i32
  }
  func.func @transform_8(%arg0: i32) -> (i32, i32) {
    %c0_i32 = arith.constant 0 : i32
    %c0_i32_0 = arith.constant 0 : i32
    %c0_i32_1 = arith.constant 0 : i32
    return %c0_i32, %c0_i32_0 : i32, i32
  }
  func.func @transform_9(%arg0: i32) -> (i32, i32, i32) {
    %c0_i32 = arith.constant 0 : i32
    %c0_i32_0 = arith.constant 0 : i32
    %c0_i32_1 = arith.constant 0 : i32
    %c0_i32_2 = arith.constant 0 : i32
    return %c0_i32, %c0_i32_0, %c0_i32_1 : i32, i32, i32
  }
  func.func @transform_10(%arg0: i32) -> (i32, i32) {
    %c0_i32 = arith.constant 0 : i32
    %c0_i32_0 = arith.constant 0 : i32
    %c0_i32_1 = arith.constant 0 : i32
    return %c0_i32, %c0_i32_0 : i32, i32
  }
  func.func @transform_11(%arg0: i32) -> (i32, i32) {
    %c0_i32 = arith.constant 0 : i32
    %c0_i32_0 = arith.constant 0 : i32
    %c0_i32_1 = arith.constant 0 : i32
    return %c0_i32, %c0_i32_0 : i32, i32
  }
  func.func @transform_12(%arg0: i32) -> (i32, i32) {
    %c0_i32 = arith.constant 0 : i32
    %c0_i32_0 = arith.constant 0 : i32
    %c0_i32_1 = arith.constant 0 : i32
    return %c0_i32, %c0_i32_0 : i32, i32
  }
  func.func @transform_13(%arg0: i32) -> (i32, i32, i32) {
    %c0_i32 = arith.constant 0 : i32
    %c0_i32_0 = arith.constant 0 : i32
    %c0_i32_1 = arith.constant 0 : i32
    %c0_i32_2 = arith.constant 0 : i32
    return %c0_i32, %c0_i32_0, %c0_i32_1 : i32, i32, i32
  }
  func.func @transform_14(%arg0: i32) -> (i32, i32) {
    %c0_i32 = arith.constant 0 : i32
    %c0_i32_0 = arith.constant 0 : i32
    %c0_i32_1 = arith.constant 0 : i32
    return %c0_i32, %c0_i32_0 : i32, i32
  }
  func.func @transform_15(%arg0: i32) -> (i32, i32, i32) {
    %c0_i32 = arith.constant 0 : i32
    %c0_i32_0 = arith.constant 0 : i32
    %c0_i32_1 = arith.constant 0 : i32
    return %arg0, %c0_i32, %c0_i32_0 : i32, i32, i32
  }
}

</mosaic_0001>

<bundles_post_ra>
// kernel: tpu_custom_call.1
= control target key start
LH: loop header
LB: loop body
LE: loop exit
PB: predicated region body
PF: predicated region fallthrough
CT: control target
= control target key end

     0   :  { %s3776_s0 = inlined_call_operand.vmem [shape: f32[2,48,96], index: 0, kind: input, shape index: {}]   ;;  %s3777_s1 = inlined_call_operand.vmem [shape: bf16[3,96,176], index: 1, kind: input, shape index: {}]   ;;  %s3778_s2 = inlined_call_operand.vmem [shape: f32[1,176], index: 2, kind: input, shape index: {}]   ;;  %s3779_s3 = inlined_call_operand.vmem [shape: bf16[22,45], index: 3, kind: input, shape index: {}]   ;;  %s3780_s4 = inlined_call_operand.vmem [shape: bf16[168,88], index: 4, kind: input, shape index: {}]   ;;  %s3781_s5 = inlined_call_operand.vmem [shape: bf16[3,88,144], index: 5, kind: input, shape index: {}]   ;;  %s3782_s6 = inlined_call_operand.vmem [shape: f32[1,144], index: 6, kind: input, shape index: {}]   ;;  %s3783_s7 = inlined_call_operand.vmem [shape: bf16[8,19], index: 7, kind: input, shape index: {}]   ;;  %s3784_s8 = inlined_call_operand.vmem [shape: bf16[128,64], index: 8, kind: input, shape index: {}]   ;;  %s3785_s9 = inlined_call_operand.vmem [shape: bf16[3,64,32], index: 9, kind: input, shape index: {}]   ;;  %s3786_s10 = inlined_call_operand.vmem [shape: f32[1,32], index: 10, kind: input, shape index: {}]   ;;  %s3787_s11 = inlined_call_operand.vmem [shape: bf16[2,5], index: 11, kind: input, shape index: {}]   ;;  %s3788_s12 = inlined_call_operand.vmem [shape: bf16[16,16], index: 12, kind: input, shape index: {}]   ;;  %s3789_s13 = inlined_call_operand.vmem [shape: bf16[1,16,32], index: 13, kind: input, shape index: {}]   ;;  %s3790_s14 = inlined_call_operand.vmem [shape: f32[1,32], index: 14, kind: input, shape index: {}]   ;;  %s3791_s15 = inlined_call_operand.hbm [shape: f32[2,2,32], index: 15, kind: output, shape index: {}]  }
   0x1   :  { %3799 = sst [smem:[#allocation11_spill]] %s3791_s15 }
   0x2   :  { %20 = vsyncpa [#allocation3], 0 }
   0x3   :  { %22 = vsyncpa [#allocation3 + $0x1], 0  ;;  %s3182_s18 = smov 0   ;;  %s3184_s19 = smov 0  }
   0x4   :  { %s3186_s20 = smov 0   ;;  %s3188_s21 = smov 0  }
   0x5 LB: > { %3800 = sst [smem:[#allocation5_spill]] %s3081_s18  ;;  %s3203_s22 = sadd.s32 4294967295, %s3093_s21   ;;  %s3093_s21 = sphi %s3188_s21, %s3812_s21   ;;  %s3089_s20 = sphi %s3186_s20, %s3814_s20   ;;  %s3085_s19 = sphi %s3184_s19, %s3816_s19   ;;  %s3081_s18 = sphi %s3182_s18, %s3815_s18  }
   0x6   : > { %3801 = sst [smem:[#allocation6_spill]] %s3089_s20  ;;  %s2479_s23 = sadd.s32 4294967294, %s3093_s21  }
   0x7   : > { %3802 = sst [smem:[#allocation7_spill]] %s3093_s21  ;;  %s3207_s24 = sadd.s32 1, %s3093_s21  }
   0x8   : > { %3803 = sst [smem:[#allocation8_spill]] %s3207_s24  ;;  %s355_s25 = sadd.s32 1, %s3089_s20 }
   0x9   : > { %s352_s26 = ssub.s32 %s3093_s21, %s3207_s24  ;;  %p365_p0 = scmp.ne.s32.totalorder %s3089_s20, %s3085_s19 }
   0xa   : > { %p353_p1 = scmp.eq.s32.totalorder %s352_s26, 0  ;;  %p366_p2 = scmp.eq.s32.totalorder %s3203_s22, 1 }
   0xb   : > { %p371_p3 = scmp.ne.s32.totalorder %s3085_s19, %s3081_s18  ;;  %p372_p4 = scmp.eq.s32.totalorder %s2479_s23, 1 }
   0xc   : > { %s3218_s27 = scalar_select %p353_p1, %s3089_s20, %s355_s25  }
   0xd   : > { %p3220_p5 = por %p366_p2, %p365_p0  ;;  %p3224_p6 = por %p372_p4, %p371_p3 }
   0xe   : > { %3804 = sst [smem:[#allocation9_spill]] %s3218_s27  ;;  %p2482_p7 = scmp.ge.s32.totalorder %s3093_s21, 1 }
   0xf   : > { %s3806_s29 = scalar_select %p3224_p6, 1, 0 }
  0x10   : > { %p440_p8 = scmp.lt.s32.totalorder %s3093_s21, 3 }
  0x11   : > { %3807 = sst [smem:[#allocation10_spill]] %s3806_s29 }
  0x12   : > { %p441_p9 = pnand %p2482_p7, %p440_p8 }
  0x13   : > { %v2891_v0 = vld [vmem:[%s3777_s1 + $0x64] ss:$8 sps:$4 sm:$0xff] (!%p441_p9)   ;;  %p488_p10 = scmp.lt.s32.totalorder (!%p441_p9), %s3203_s22, 1  ;;  %v2893_v1 = vld [vmem:[%s3777_s1 + $0x60] ss:$8 sps:$4 sm:$0xff] (!%p441_p9)   ;;  %v3095_v2 = vmov (!%p441_p9), 0  }
  0x14   : > { %444 = sbr.rel (%p441_p9) target bundleno = 2776 (0xad8), region = 80  ;;  %654 = vmatprep.mubr.bf16.mxu0 (!%p441_p9), %v3095_v2  ;;  %1140 = vmatprep.mubr.bf16.mxu1 (!%p441_p9), %v3095_v2  ;;  %v2894_v3 = vld [vmem:[%s3777_s1 + $0x74] ss:$8 sps:$4 sm:$0xff] (!%p441_p9)   ;;  %v2896_v4 = vld [vmem:[%s3777_s1 + $0x70] ss:$8 sps:$4 sm:$0xff] (!%p441_p9)   ;;  %vm612_vm1 = vcmask (!%p441_p9), 785408  }
  0x15   : > { %622 = vmatprep.subr.bf16.mxu0 (!%p441_p9), %v2891_v0  ;;  %v2897_v5 = vld [vmem:[%s3777_s1 + $0x84] ss:$8 sps:$4 sm:$0xff] (!%p441_p9)   ;;  %v2899_v6 = vld [vmem:[%s3777_s1 + $0x80] ss:$8 sps:$4 sm:$0xff] (!%p441_p9)   ;;  %v2900_v7 = vld [vmem:[%s3777_s1 + $0x94] ss:$8 sps:$4 sm:$0xff] (!%p441_p9)  }
  0x16   : > { %623 = vmatpush1.bf16.msra.mxu0 (!%p441_p9), %v2893_v1  ;;  %v2902_v13 = vld [vmem:[%s3777_s1 + $0x90] ss:$8 sps:$4 sm:$0xff] (!%p441_p9)   ;;  %v2903_v16 = vld [vmem:[%s3777_s1 + $0xa4] ss:$8 sps:$4 sm:$0xff] (!%p441_p9)   ;;  %v2905_v17 = vld [vmem:[%s3777_s1 + $0xa0] ss:$8 sps:$4 sm:$0xff] (!%p441_p9)   ;;  %v982_v1 = vlaneseq (!%p441_p9) }
  0x17   : > { %624 = vmatprep.subr.bf16.mxu0 (!%p441_p9), %v2894_v3  ;;  %v2906_v23 = vld [vmem:[%s3777_s1 + $0xb4] ss:$8 sps:$4 sm:$0xff] (!%p441_p9)   ;;  %v2908_v25 = vld [vmem:[%s3777_s1 + $0xb0] ss:$8 sps:$4 sm:$0xff] (!%p441_p9)   ;;  %vm528_vm0 = vsmask.f32 (!%p441_p9), 7424 }
  0x18   : > { %v2911_v28 = vld [vmem:[%s3777_s1 + $0x4] ss:$8 sps:$4 sm:$0xff] (!%p441_p9)   ;;  %v2909_v31 = vld [vmem:[%s3777_s1] ss:$8 sps:$4 sm:$0xff] (!%p441_p9)   ;;  %v2914_v33 = vld [vmem:[%s3777_s1 + $0x14] ss:$8 sps:$4 sm:$0xff] (!%p441_p9)  }
  0x19   : > { %v2912_v34 = vld [vmem:[%s3777_s1 + $0x10] ss:$8 sps:$4 sm:$0xff] (!%p441_p9)   ;;  %v2917_v36 = vld [vmem:[%s3777_s1 + $0x24] ss:$8 sps:$4 sm:$0xff] (!%p441_p9)   ;;  %v2915_v38 = vld [vmem:[%s3777_s1 + $0x20] ss:$8 sps:$4 sm:$0xff] (!%p441_p9)  }
  0x1a   : > { %625 = vmatpush1.bf16.msra.mxu0 (!%p441_p9), %v2896_v4  ;;  %v2920_v39 = vld [vmem:[%s3777_s1 + $0x34] ss:$8 sps:$4 sm:$0xff] (!%p441_p9)   ;;  %v2918_v41 = vld [vmem:[%s3777_s1 + $0x30] ss:$8 sps:$4 sm:$0xff] (!%p441_p9)   ;;  %v2923_v43 = vld [vmem:[%s3777_s1 + $0x44] ss:$8 sps:$4 sm:$0xff] (!%p441_p9)  }
  0x1b   : > { %s489_s27 = scalar_select %p488_p10, %s3203_s22, 1  ;;  %626 = vmatprep.subr.bf16.mxu0 %v2897_v5  ;;  %v2921_v44 = vld [vmem:[%s3777_s1 + $0x40] ss:$8 sps:$4 sm:$0xff]   ;;  %v2926_v46 = vld [vmem:[%s3777_s1 + $0x54] ss:$8 sps:$4 sm:$0xff]   ;;  %vm830_vm2 = vcmask 1046528  }
  0x1c   : > { %v2924_v47 = vld [vmem:[%s3777_s1 + $0x50] ss:$8 sps:$4 sm:$0xff]   ;;  %v2929_v48 = vld [vmem:[%s3777_s1 + $0xc4] ss:$8 sps:$4 sm:$0xff]   ;;  %v2927_v49 = vld [vmem:[%s3777_s1 + $0xc0] ss:$8 sps:$4 sm:$0xff]  }
  0x1d   : > { %s2825_s23 = smul.u32 48, %s489_s27  ;;  %v2932_v50 = vld [vmem:[%s3777_s1 + $0xd4] ss:$8 sps:$4 sm:$0xff]   ;;  %v2930_v51 = vld [vmem:[%s3777_s1 + $0xd0] ss:$8 sps:$4 sm:$0xff]   ;;  %v3385_v3 = vshrl.u32 %v982_v1, 7 }
  0x1e   : > { %627 = vmatpush1.bf16.msra.mxu0 %v2899_v6  ;;  %v2935_v52 = vld [vmem:[%s3777_s1 + $0xe4] ss:$8 sps:$4 sm:$0xff]   ;;  %v2933_v53 = vld [vmem:[%s3777_s1 + $0xe0] ss:$8 sps:$4 sm:$0xff]   ;;  %v2938_v54 = vld [vmem:[%s3777_s1 + $0xf4] ss:$8 sps:$4 sm:$0xff]  }
  0x1f   : > { %s492_s18 = scalar_lea.vmem %s3776_s0, %s2825_s23  ;;  %628 = vmatprep.subr.bf16.mxu0 %v2900_v7  ;;  %v2936_v55 = vld [vmem:[%s3777_s1 + $0xf0] ss:$8 sps:$4 sm:$0xff]   ;;  %v2941_v56 = vld [vmem:[%s3777_s1 + $0x104] ss:$8 sps:$4 sm:$0xff]   ;;  %v2939_v57 = vld [vmem:[%s3777_s1 + $0x100] ss:$8 sps:$4 sm:$0xff]  }
  0x20   : > { %v494_v8 = vld [vmem:[%s492_s18] sm:$0xff]  ;;  %v495_v9 = vld [vmem:[%s492_s18 + $0x8] sm:$0xff]  ;;  %v496_v10 = vld [vmem:[%s492_s18 + $0x10] sm:$0xff]  ;;  %v984_v4 = vsub.s32 0, %v3385_v3  ;;  %v988_v6 = vsub.s32 1, %v3385_v3  ;;  %vm1099_vm3 = vcmask 1045504  }
  0x21   : > { %v497_v11 = vld [vmem:[%s492_s18 + $0x18] sm:$0xff]  ;;  %v3258_v12 = vpack.c.bf16 %v495_v9, %v494_v8  ;;  %v498_v18 = vld [vmem:[%s492_s18 + $0x20] sm:$0xff]  ;;  %v499_v19 = vld [vmem:[%s492_s18 + $0x28] sm:$0xff]  ;;  %vm1092_vm4 = vcmask 367616   ;;  %vm1288_vm5 = vcmask 1043456   ;;  %s3097_s17 = smov 120  }
  0x22   : > { %v3263_v14 = vpack.c.bf16 %v497_v11, %v496_v10  ;;  %629 = vmatpush1.bf16.msra.mxu0 %v2902_v13  ;;  %v3277_v24 = vpack.c.bf16 %v499_v19, %v498_v18  ;;  %v2944_v58 = vld [vmem:[%s3777_s1 + $0x114] ss:$8 sps:$4 sm:$0xff]   ;;  %v2942_v59 = vld [vmem:[%s3777_s1 + $0x110] ss:$8 sps:$4 sm:$0xff]   ;;  %v980_v5 = vld [vmem:[%s3778_s2] sm:$0x3] }
  0x23   : > { %v532_v15 = vshll.u32 %v3258_v12, 16  ;;  %v530_v20 = vshrl.u32 %v3258_v12, 16  ;;  %630 = vmatprep.subr.bf16.mxu0 %v2903_v16  ;;  %v831_v60 = vrot.slane %v3258_v12, 1  ;;  %v985_v7 = vrot.slane %v980_v5, %v984_v4  ;;  %s2686_s15 = sshll.u32 %s3203_s22, 5  ;;  %s3808_s23 = sld [smem:[#allocation11_spill]] }
  0x24   : > { %v537_v22 = vshll.u32 %v3263_v14, 16  ;;  %v545_v29 = vshll.u32 %v3277_v24, 16  ;;  %v541_v32 = vshrl.u32 %v3263_v14, 16  ;;  %v549_v42 = vshrl.u32 %v3277_v24, 16  ;;  %s3101_s26 = smov [#allocation2]  }
  0x25   : > { %v534_v21 = vrot.slane %v532_v15, 1  ;;  %v832_v61 = vrot.slane %v3263_v14, 1  ;;  %v834_v63 = vrot.slane %v3277_v24, 1  ;;  %v989_v8 = vrot.slane %v980_v5, %v988_v6 }
  0x26   : > { %631 = vmatpush1.bf16.msra.mxu0 %v2905_v17  ;;  %v539_v27 = vrot.slane %v537_v22, 1  ;;  %v547_v35 = vrot.slane %v545_v29, 1  ;;  %vm1177_vm6 = vcmask 982016   ;;  %vm1281_vm7 = vcmask 326656  }
  0x27   : > { %v535_v26 = vor.u32 %v534_v21, %v530_v20  ;;  %632 = vmatprep.subr.bf16.mxu0 %v2906_v23  ;;  %v833_v62 = vsel %vm830_vm2, %v831_v60, %v832_v61  ;;  %v835_v0 = vsel %vm830_vm2, %v832_v61, %v834_v63  ;;  %vm1435_vm8 = vcmask 719872  }
  0x28   : > { %v543_v37 = vor.u32 %v541_v32, %v539_v27  ;;  %v551_v45 = vor.u32 %v549_v42, %v547_v35  ;;  %vm1817_vm9 = vcmask 1040384   ;;  %vm1818_vm10 = vcmask 1041408  }
  0x29   : > { %v540_v30 = vsel %vm528_vm0, %v535_v26, %v539_v27  ;;  %vm1813_vm11 = vcmask 154624   ;;  %vm3099_vm12 = vmmov 0   ;;  %vm1874_vm13 = vcmask 916480   ;;  %s3734_s18 = scalar_lea.hbm %s3808_s23, %s2686_s15 }
  0x2a   : > { %633 = vmatpush1.bf16.msra.mxu0 %v2908_v25  ;;  %v548_v40 = vsel %vm528_vm0, %v543_v37, %v547_v35  ;;  %vm2032_vm14 = vcmask 523264   ;;  %vm2240_vm15 = vcmask 1042432  }
  0x2b   : > { %751 = vmatprep.subr.bf16.mxu0 %v2911_v28 }
  0x2d   : > { %2509 = vmatmul.mubr.msk.bf16.vlgmr.msra.gmra.mrb[0].mxu0 %vm612_vm1, %v540_v30 }
  0x2e   : > { %752 = vmatpush1.bf16.msra.mxu0 %v2909_v31  ;;  %664 = vmatprep.mubr.bf16.mxu0 %v3095_v2 }
  0x2f   : > { %753 = vmatprep.subr.bf16.mxu0 %v2914_v33 }
  0x32   : > { %754 = vmatpush1.bf16.msra.mxu0 %v2912_v34 }
  0x33   : > { %755 = vmatprep.subr.bf16.mxu0 %v2917_v36 }
  0x35   : > { %2510 = vmatmul.mubr.msk.bf16.gmra.mrb[4].mxu0 %vm612_vm1, %v548_v40 }
  0x36   : > { %756 = vmatpush1.bf16.msra.mxu0 %v2915_v38  ;;  %674 = vmatprep.mubr.bf16.mxu0 %v3095_v2 }
  0x37   : > { %757 = vmatprep.subr.bf16.mxu0 %v2920_v39 }
  0x3a   : > { %758 = vmatpush1.bf16.msra.mxu0 %v2918_v41 }
  0x3b   : > { %759 = vmatprep.subr.bf16.mxu0 %v2923_v43 }
  0x3d   : > { %2511 = vmatmul.mubr.msk.bf16.gmra.mrb[8].mxu0 %vm612_vm1, %v551_v45 }
  0x3e   : > { %760 = vmatpush1.bf16.msra.mxu0 %v2921_v44  ;;  %783 = vmatprep.mubr.bf16.mxu0 %v3095_v2 }
  0x3f   : > { %761 = vmatprep.subr.bf16.mxu0 %v2926_v46 }
  0x42   : > { %762 = vmatpush1.bf16.msra.mxu0 %v2924_v47 }
  0x43   : > { %905 = vmatprep.subr.bf16.mxu0 %v2929_v48 }
  0x45   : > { %2524 = vmatmul.mubr.msk.bf16.vlgmr.msra.gmra.mrb[0].mxu0 %vm612_vm1, %v3258_v12 }
  0x46   : > { %906 = vmatpush1.bf16.msra.mxu0 %v2927_v49  ;;  %793 = vmatprep.mubr.bf16.mxu0 %v3095_v2 }
  0x47   : > { %907 = vmatprep.subr.bf16.mxu0 %v2932_v50 }
  0x4a   : > { %908 = vmatpush1.bf16.msra.mxu0 %v2930_v51 }
  0x4b   : > { %909 = vmatprep.subr.bf16.mxu0 %v2935_v52 }
  0x4d   : > { %2525 = vmatmul.mubr.msk.bf16.gmra.mrb[4].mxu0 %vm612_vm1, %v3263_v14 }
  0x4e   : > { %910 = vmatpush1.bf16.msra.mxu0 %v2933_v53  ;;  %803 = vmatprep.mubr.bf16.mxu0 %v3095_v2 }
  0x4f   : > { %911 = vmatprep.subr.bf16.mxu0 %v2938_v54 }
  0x52   : > { %912 = vmatpush1.bf16.msra.mxu0 %v2936_v55 }
  0x53   : > { %913 = vmatprep.subr.bf16.mxu0 %v2941_v56 }
  0x55   : > { %2526 = vmatmul.mubr.msk.bf16.gmra.mrb[8].mxu0 %vm612_vm1, %v3277_v24 }
  0x56   : > { %914 = vmatpush1.bf16.msra.mxu0 %v2939_v57  ;;  %937 = vmatprep.mubr.bf16.mxu0 %v3095_v2 }
  0x57   : > { %915 = vmatprep.subr.bf16.mxu0 %v2944_v58 }
  0x5a   : > { %916 = vmatpush1.bf16.msra.mxu0 %v2942_v59 }
  0x5d   : > { %2551 = vmatmul.mubr.msk.bf16.vlgmr.msra.gmra.mrb[0].mxu0 %vm612_vm1, %v833_v62 }
  0x5e   : > { %947 = vmatprep.mubr.bf16.mxu0 %v3095_v2 }
  0x65   : > { %2552 = vmatmul.mubr.msk.bf16.gmra.mrb[4].mxu0 %vm612_vm1, %v835_v0 }
  0x66   : > { %957 = vmatprep.mubr.bf16.mxu0 %v3095_v2 }
  0x6d   : > { %2553 = vmatmul.mubr.msk.bf16.gmra.mrb[8].mxu0 %vm612_vm1, %v834_v63  ;;  %vm2300_vm1 = vcmask 130048  }
  0x6e   : > { %1859 = vmatprep.mubr.bf16.mxu0 %v3095_v2 }
 0x130   : > { %v939_v9 = vpop.f32.mrb[0].mxu0 }
 0x131   : > { %v992_v10 = vadd.f32 %v985_v7, %v939_v9  ;;  %v941_v11 = vpop.f32.mrb[1].mxu0 }
 0x132   : > { %v993_v12 = vadd.f32 %v989_v8, %v941_v11  ;;  %v943_v13 = vpop.f32.mrb[2].mxu0 }
 0x133   : > { %v1004_v14 = vmax.f32 %v992_v10, 0.0  ;;  %v994_v15 = vadd.f32 %v985_v7, %v943_v13  ;;  %v945_v16 = vpop.f32.mrb[3].mxu0 }
 0x134   : > { %v1005_v17 = vmax.f32 %v993_v12, 0.0  ;;  %v995_v18 = vadd.f32 %v989_v8, %v945_v16 }
 0x135   : > { %v1006_v19 = vmax.f32 %v994_v15, 0.0  ;;  %v1029_v21 = vrot.slane %v1004_v14, 1 }
 0x136   : > { %v1007_v20 = vmax.f32 %v995_v18, 0.0  ;;  %v1032_v23 = vrot.slane %v1005_v17, 1  ;;  %v3096_v18 = vmov 65535  }
 0x137   : > { %v1030_v22 = vrot.slane %v1006_v19, 1 }
 0x138   : > { %v1033_v24 = vrot.slane %v1007_v20, 1  ;;  %v949_v25 = vpop.f32.mrb[4].mxu0 }
 0x139   : > { %v996_v26 = vadd.f32 %v985_v7, %v949_v25  ;;  %v951_v27 = vpop.f32.mrb[5].mxu0  ;;  %v1031_v28 = vsel %vm830_vm2, %v1029_v21, %v1030_v22 }
 0x13a   : > { %v997_v29 = vadd.f32 %v989_v8, %v951_v27  ;;  %v953_v30 = vpop.f32.mrb[6].mxu0  ;;  %v1034_v31 = vsel %vm830_vm2, %v1032_v23, %v1033_v24  ;;  %v1063_v32 = vmax.f32 %v1004_v14, %v1031_v28 }
 0x13b   : > { %v1008_v33 = vmax.f32 %v996_v26, 0.0  ;;  %v998_v34 = vadd.f32 %v985_v7, %v953_v30  ;;  %v955_v35 = vpop.f32.mrb[7].mxu0  ;;  %v1064_v36 = vmax.f32 %v1005_v17, %v1034_v31  ;;  %v2945_v30 = vld [vmem:[%s3779_s3] sm:$0xff]   ;;  %v2946_v31 = vld [vmem:[%s3779_s3 + $0x8] ss:$0 sps:$4 sm:$0x77]  }
 0x13c   : > { %v1009_v37 = vmax.f32 %v997_v29, 0.0  ;;  %v999_v38 = vadd.f32 %v989_v8, %v955_v35  ;;  %v2950_v35 = vld [vmem:[%s3780_s4 + $0x18] sm:$0xff]  }
 0x13d   : > { %v1035_v39 = vrot.slane %v1008_v33, 1  ;;  %v1010_v40 = vmax.f32 %v998_v34, 0.0  ;;  %v2949_v34 = vld [vmem:[%s3780_s4 + $0x10] sm:$0xff]  }
 0x13e   : > { %v1037_v41 = vrot.slane %v1009_v37, 1  ;;  %v1011_v42 = vmax.f32 %v999_v38, 0.0  ;;  %v2953_v38 = vld [vmem:[%s3780_s4 + $0x30] sm:$0xff]  }
 0x13f   : > { %v1039_v43 = vrot.slane %v1010_v40, 1  ;;  %v1036_v44 = vsel %vm830_vm2, %v1030_v22, %v1035_v39 }
 0x140   : > { %v1041_v45 = vrot.slane %v1011_v42, 1  ;;  %v959_v46 = vpop.f32.mrb[8].mxu0  ;;  %v1038_v47 = vsel %vm830_vm2, %v1033_v24, %v1037_v41  ;;  %v1065_v48 = vmax.f32 %v1006_v19, %v1036_v44 }
 0x141   : > { %v1000_v49 = vadd.f32 %v985_v7, %v959_v46  ;;  %v961_v50 = vpop.f32.mrb[9].mxu0  ;;  %v1066_v51 = vmax.f32 %v1007_v20, %v1038_v47  ;;  %v1040_v52 = vsel %vm830_vm2, %v1035_v39, %v1039_v43  ;;  %v2954_v39 = vld [vmem:[%s3780_s4 + $0x38] sm:$0xff]  }
 0x142   : > { %v1001_v53 = vadd.f32 %v989_v8, %v961_v50  ;;  %v963_v54 = vpop.f32.mrb[10].mxu0  ;;  %v1078_v55 = vpack.c.bf16 %v1065_v48, %v1063_v32  ;;  %v1042_v56 = vsel %vm830_vm2, %v1037_v41, %v1041_v45  ;;  %v1067_v57 = vmax.f32 %v1008_v33, %v1040_v52  ;;  %v2947_v32 = vld [vmem:[%s3780_s4] sm:$0xff]   ;;  %v2948_v33 = vld [vmem:[%s3780_s4 + $0x8] sm:$0xff]  }
 0x143   : > { %v1012_v58 = vmax.f32 %v1000_v49, 0.0  ;;  %v1002_v59 = vadd.f32 %v985_v7, %v963_v54  ;;  %v965_v60 = vpop.f32.mrb[11].mxu0  ;;  %v1079_v61 = vpack.c.bf16 %v1066_v51, %v1064_v36  ;;  %v1068_v62 = vmax.f32 %v1009_v37, %v1042_v56  ;;  %v2951_v36 = vld [vmem:[%s3780_s4 + $0x20] sm:$0xff]   ;;  %v2952_v37 = vld [vmem:[%s3780_s4 + $0x28] sm:$0xff]  }
 0x144   : > { %v1013_v63 = vmax.f32 %v1001_v53, 0.0  ;;  %v1003_v0 = vadd.f32 %v989_v8, %v965_v60  ;;  %v1100_v8 = vsel %vm1099_vm3, 4294967295, %v3096_v18  ;;  %v2956_v41 = vld [vmem:[%s3780_s4 + $0x48] sm:$0xff]   ;;  %v2960_v54 = vld [vmem:[%s3781_s5 + $0x5c] ss:$8 sps:$4 sm:$0xff]  }
 0x145   : > { %v1043_v1 = vrot.slane %v1012_v58, 1  ;;  %v1014_v5 = vmax.f32 %v1002_v59, 0.0  ;;  %1108 = vmatprep.subr.bf16.mxu1 %v1079_v61  ;;  %v1101_v26 = vsel %vm830_vm2, %v1100_v8, 0 }
 0x146   : > { %v1045_v9 = vrot.slane %v1013_v63, 1  ;;  %v1015_v10 = vmax.f32 %v1003_v0, 0.0  ;;  %1109 = vmatpush1.bf16.msra.mxu1 %v1078_v55 }
 0x147   : > { %v1047_v11 = vrot.slane %v1014_v5, 1  ;;  %v1044_v12 = vsel %vm830_vm2, %v1039_v43, %v1043_v1 }
 0x148   : > { %v1049_v13 = vrot.slane %v1015_v10, 1  ;;  %v1046_v14 = vsel %vm830_vm2, %v1041_v45, %v1045_v9  ;;  %v1069_v15 = vmax.f32 %v1010_v40, %v1044_v12  ;;  %v2955_v40 = vld [vmem:[%s3780_s4 + $0x40] sm:$0xff]  }
 0x149   : > { %v1048_v7 = vsel %vm830_vm2, %v1043_v1, %v1047_v11  ;;  %v1073_v16 = vmax.f32 %v1014_v5, %v1047_v11  ;;  %v1070_v17 = vmax.f32 %v1011_v42, %v1046_v14  ;;  %v2957_v42 = vld [vmem:[%s3780_s4 + $0x50] ss:$0 sps:$4 sm:$0xff]   ;;  %v2958_v14 = vld [vmem:[%s3781_s5 + $0x58] ss:$8 sps:$4 sm:$0xff]  }
 0x14a   : > { %v1071_v19 = vmax.f32 %v1012_v58, %v1048_v7  ;;  %v1050_v20 = vsel %vm830_vm2, %v1045_v9, %v1049_v13  ;;  %v1074_v21 = vmax.f32 %v1015_v10, %v1049_v13  ;;  %v1080_v22 = vpack.c.bf16 %v1069_v15, %v1067_v57  ;;  %v2963_v7 = vld [vmem:[%s3781_s5 + $0x6c] ss:$8 sps:$4 sm:$0xff]  }
 0x14b   : > { %v1072_v23 = vmax.f32 %v1013_v63, %v1050_v20  ;;  %v1081_v24 = vpack.c.bf16 %v1070_v17, %v1068_v62  ;;  %v1290_v43 = vsel %vm1288_vm5, %v2957_v42, 0 }
 0x14c   : > { %v1082_v25 = vpack.c.bf16 %v1073_v16, %v1071_v19  ;;  %v2961_v19 = vld [vmem:[%s3781_s5 + $0x68] ss:$8 sps:$4 sm:$0xff]  }
 0x14d   : > { %v1083_v27 = vpack.c.bf16 %v1074_v21, %v1072_v23  ;;  %1110 = vmatprep.subr.bf16.mxu1 %v1081_v24  ;;  %v2966_v21 = vld [vmem:[%s3781_s5 + $0x7c] ss:$8 sps:$4 sm:$0xff]   ;;  %v2969_v24 = vld [vmem:[%s3781_s5 + $0x8c] ss:$8 sps:$4 sm:$0xff]  }
 0x14e   : > { %1111 = vmatpush1.bf16.msra.mxu1 %v1080_v22  ;;  %v1103_v29 = vand.u32 %v1101_v26, %v1082_v25  ;;  %v2964_v22 = vld [vmem:[%s3781_s5 + $0x78] ss:$8 sps:$4 sm:$0xff]   ;;  %v2967_v25 = vld [vmem:[%s3781_s5 + $0x88] ss:$8 sps:$4 sm:$0xff]  }
 0x14f   : > { %v1106_v28 = vand.u32 %v1101_v26, %v1083_v27  ;;  %v2972_v26 = vld [vmem:[%s3781_s5 + $0x9c] ss:$8 sps:$4 sm:$0xff]   ;;  %v2970_v27 = vld [vmem:[%s3781_s5 + $0x98] ss:$8 sps:$4 sm:$0xff]  }
 0x151   : > { %1112 = vmatprep.subr.bf16.mxu1 %v1106_v28  ;;  %v2581_v28 = vld [vmem:[%s3781_s5 + $0xa8] sm:$0xff] }
 0x152   : > { %1113 = vmatpush1.bf16.msra.mxu1 %v1103_v29  ;;  %v2593_v29 = vcombine.high %v2581_v28, %v2581_v28 }
 0x153   : > { %1292 = vmatprep.subr.bf16.mxu1 %v3095_v2 }
 0x155   : > { %2556 = vmatmul.mubr.msk.bf16.vlgmr.msra.gmra.mrb[0].mxu1 %vm1092_vm4, %v2945_v30  ;;  %v2592_v30 = vcombine.low %v2581_v28, %v2581_v28 }
 0x156   : > { %1150 = vmatprep.mubr.bf16.mxu1 %v3095_v2  ;;  %1293 = vmatpush1.bf16.msra.mxu1 %v2947_v32  ;;  %v2977_v32 = vld [vmem:[%s3781_s5 + $0x4] ss:$8 sps:$4 sm:$0xff]  }
 0x157   : > { %1294 = vmatprep.subr.bf16.mxu1 %v3095_v2 }
 0x15a   : > { %1295 = vmatpush1.bf16.msra.mxu1 %v2948_v33 }
 0x15b   : > { %1296 = vmatprep.subr.bf16.mxu1 %v3095_v2 }
 0x15d   : > { %2557 = vmatmul.mubr.msk.bf16.gmra.mrb[4].mxu1 %vm1092_vm4, %v2946_v31  ;;  %v1443_v31 = vsel %vm1288_vm5, %v2592_v30, 0 }
 0x15e   : > { %1297 = vmatpush1.bf16.msra.mxu1 %v2949_v34 }
 0x15f   : > { %1298 = vmatprep.subr.bf16.mxu1 %v3095_v2 }
 0x162   : > { %1299 = vmatpush1.bf16.msra.mxu1 %v2950_v35 }
 0x163   : > { %1300 = vmatprep.subr.bf16.mxu1 %v3095_v2 }
 0x166   : > { %1301 = vmatpush1.bf16.msra.mxu1 %v2951_v36 }
 0x167   : > { %1302 = vmatprep.subr.bf16.mxu1 %v3095_v2 }
 0x16a   : > { %1303 = vmatpush1.bf16.msra.mxu1 %v2952_v37 }
 0x16b   : > { %1304 = vmatprep.subr.bf16.mxu1 %v3095_v2 }
 0x16e   : > { %1305 = vmatpush1.bf16.msra.mxu1 %v2953_v38 }
 0x16f   : > { %1306 = vmatprep.subr.bf16.mxu1 %v3095_v2 }
 0x172   : > { %1307 = vmatpush1.bf16.msra.mxu1 %v2954_v39 }
 0x173   : > { %1308 = vmatprep.subr.bf16.mxu1 %v3095_v2 }
 0x176   : > { %1309 = vmatpush1.bf16.msra.mxu1 %v2955_v40 }
 0x177   : > { %1310 = vmatprep.subr.bf16.mxu1 %v3095_v2 }
 0x17a   : > { %1311 = vmatpush1.bf16.msra.mxu1 %v2956_v41 }
 0x17b   : > { %1312 = vmatprep.subr.bf16.mxu1 %v3095_v2 }
 0x17e   : > { %1313 = vmatpush1.bf16.msra.mxu1 %v1290_v43 }
 0x17f   : > { %1448 = vmatprep.subr.bf16.mxu1 %v2960_v54 }
 0x228   : > { %v1142_v44 = vpop.f32.mrb[0].mxu1 }
 0x229   : > { %v1144_v45 = vpop.f32.mrb[1].mxu1 }
 0x22a   : > { %v1146_v46 = vpop.f32.mrb[2].mxu1  ;;  %v2871_v47 = vpack.i.bf16 %v1144_v45, %v1142_v44 }
 0x22b   : > { %v1148_v48 = vpop.f32.mrb[3].mxu1 }
 0x22c   : > { %v2876_v49 = vpack.i.bf16 %v1148_v48, %v1146_v46  ;;  %2872 = vrot.lane.b32.xlu0 %v2871_v47, %s3097_s17 }
 0x230   : > { %2877 = vrot.lane.b32.xlu0 %v2876_v49, %s3097_s17  ;;  %v1152_v50 = vpop.f32.mrb[4].mxu1 }
 0x231   : > { %v1154_v51 = vpop.f32.mrb[5].mxu1 }
 0x232   : > { %v1156_v52 = vpop.f32.mrb[6].mxu1  ;;  %v2881_v53 = vpack.i.bf16 %v1154_v51, %v1152_v50 }
 0x233   : > { %v1157_v55 = vpop.f32.mrb[7].mxu1 }
 0x234   : > { %2882 = vrot.lane.b32.xlu1 %v2881_v53, %s3097_s17  ;;  %v2980_v53 = vld [vmem:[%s3781_s5 + $0x14] ss:$8 sps:$4 sm:$0xff]   ;;  %v2978_v55 = vld [vmem:[%s3781_s5 + $0x10] ss:$8 sps:$4 sm:$0xff]   ;;  %s3100_s17 = smov 112  }
 0x29e   : > { %v2873_v56 = vpop.permute.xlu0 %2872 }
 0x29f   : > { %v2875_v57 = vunpack.i.h.bf16 %v2873_v56  ;;  %v2874_v58 = vunpack.i.l.bf16 %v2873_v56  ;;  %v2983_v56 = vld [vmem:[%s3781_s5 + $0x24] ss:$8 sps:$4 sm:$0xff]  }
 0x2a1   : > { %v1178_v60 = vsel %vm1177_vm6, %v2874_v58, %v2875_v57  ;;  %v1188_v63 = vmax.f32 %v1144_v45, %v2875_v57  ;;  %v2981_v58 = vld [vmem:[%s3781_s5 + $0x20] ss:$8 sps:$4 sm:$0xff]  }
 0x2a2   : > { %v2878_v59 = vpop.permute.xlu0 %2877  ;;  %v1187_v5 = vmax.f32 %v1142_v44, %v1178_v60  ;;  %v2986_v60 = vld [vmem:[%s3781_s5 + $0x34] ss:$8 sps:$4 sm:$0xff]  }
 0x2a3   : > { %v2880_v61 = vunpack.i.h.bf16 %v2878_v59  ;;  %v2879_v62 = vunpack.i.l.bf16 %v2878_v59 }
 0x2a5   : > { %v1190_v0 = vmax.f32 %v1148_v48, %v2880_v61  ;;  %v1179_v1 = vsel %vm1177_vm6, %v2879_v62, %v2880_v61  ;;  %v2984_v61 = vld [vmem:[%s3781_s5 + $0x30] ss:$8 sps:$4 sm:$0xff]   ;;  %v2989_v62 = vld [vmem:[%s3781_s5 + $0x44] ss:$8 sps:$4 sm:$0xff]  }
 0x2a6   : > { %v1189_v9 = vmax.f32 %v1146_v46, %v1179_v1  ;;  %v2883_v10 = vpop.permute.xlu1 %2882 }
 0x2a7   : > { %v1194_v11 = vpack.c.bf16 %v1190_v0, %v1188_v63  ;;  %v2885_v12 = vunpack.i.h.bf16 %v2883_v10  ;;  %v2884_v13 = vunpack.i.l.bf16 %v2883_v10  ;;  %v1352_v63 = vld [vmem:[%s3781_s5 + $0x50] sm:$0xff]  ;;  %v2987_v0 = vld [vmem:[%s3781_s5 + $0x40] ss:$8 sps:$4 sm:$0xff]  }
 0x2a8   : > { %v1193_v15 = vpack.c.bf16 %v1189_v9, %v1187_v5  ;;  %v2608_v1 = vcombine.high %v1352_v63, %v1352_v63  ;;  %v2607_v5 = vcombine.low %v1352_v63, %v1352_v63  ;;  %v2994_v10 = vld [vmem:[%s3781_s5 + $0xb4] ss:$8 sps:$4 sm:$0xff]  }
 0x2a9   : > { %v1192_v16 = vmax.f32 %v1154_v51, %v2885_v12  ;;  %2569 = vmatprep.mubr.msk.bf16.mxu1 %vm1281_vm7, %v1194_v11  ;;  %v1180_v17 = vsel %vm1177_vm6, %v2884_v13, %v2885_v12  ;;  %v2975_v51 = vld [vmem:[%s3781_s5] ss:$8 sps:$4 sm:$0xff]   ;;  %v2992_v11 = vld [vmem:[%s3781_s5 + $0xb0] ss:$8 sps:$4 sm:$0xff]   ;;  %v2997_v12 = vld [vmem:[%s3781_s5 + $0xc4] ss:$8 sps:$4 sm:$0xff]  }
 0x2aa   : > { %1325 = vmatmul.mubr.bf16.vlgmr.msra.gmra.mrb[8].mxu1 %v1193_v15  ;;  %v1191_v20 = vmax.f32 %v1152_v50, %v1180_v17  ;;  %v1559_v9 = vsel %vm1288_vm5, %v2607_v5, 0  ;;  %v2995_v13 = vld [vmem:[%s3781_s5 + $0xc0] ss:$8 sps:$4 sm:$0xff]   ;;  %v2998_v15 = vld [vmem:[%s3781_s5 + $0xd0] ss:$8 sps:$4 sm:$0xff]  }
 0x2ab   : > { %v1196_v8 = vpack.c.bf16 %v1192_v16, %v1192_v16  ;;  %1449 = vmatpush1.bf16.msra.mxu1 %v2958_v14  ;;  %v3000_v14 = vld [vmem:[%s3781_s5 + $0xd4] ss:$8 sps:$4 sm:$0xff]   ;;  %v3001_v16 = vld [vmem:[%s3781_s5 + $0xe0] ss:$8 sps:$4 sm:$0xff]  }
 0x2ac   : > { %1450 = vmatprep.subr.bf16.mxu1 %v2963_v7  ;;  %v1195_v23 = vpack.c.bf16 %v1191_v20, %v1191_v20  ;;  %v3003_v7 = vld [vmem:[%s3781_s5 + $0xe4] ss:$8 sps:$4 sm:$0xff]   ;;  %v3006_v17 = vld [vmem:[%s3781_s5 + $0xf4] ss:$8 sps:$4 sm:$0xff]  }
 0x2ad   : > { %2570 = vmatprep.mubr.msk.bf16.mxu1 %vm1281_vm7, %v1196_v8  ;;  %v2622_v8 = vld [vmem:[%s3781_s5 + $0x100] sm:$0xff] }
 0x2ae   : > { %v2634_v20 = vcombine.high %v2622_v8, %v2622_v8 }
 0x2af   : > { %1451 = vmatpush1.bf16.msra.mxu1 %v2961_v19  ;;  %v3004_v19 = vld [vmem:[%s3781_s5 + $0xf0] ss:$8 sps:$4 sm:$0xff]  }
 0x2b0   : > { %1452 = vmatprep.subr.bf16.mxu1 %v2966_v21  ;;  %v2633_v21 = vcombine.low %v2622_v8, %v2622_v8 }
 0x2b2   : > { %1333 = vmatmul.mubr.bf16.gmra.mrb[12].mxu1 %v1195_v23 }
 0x2b3   : > { %1453 = vmatpush1.bf16.msra.mxu1 %v2964_v22  ;;  %1480 = vmatprep.mubr.bf16.mxu1 %v3095_v2  ;;  %v1694_v22 = vsel %vm1288_vm5, %v2633_v21, 0  ;;  %v3098_v21 = vmov 0.0  }
 0x2b4   : > { %1454 = vmatprep.subr.bf16.mxu1 %v2969_v24 }
 0x2b7   : > { %1455 = vmatpush1.bf16.msra.mxu1 %v2967_v25 }
 0x2b8   : > { %1456 = vmatprep.subr.bf16.mxu1 %v2972_v26 }
 0x2bb   : > { %1457 = vmatpush1.bf16.msra.mxu1 %v2970_v27 }
 0x2bc   : > { %2594 = vmatprep.subr.msk.bf16.mxu1 %vm1288_vm5, %v2593_v29 }
 0x2bf   : > { %1459 = vmatpush1.bf16.msra.mxu1 %v1443_v31 }
 0x2c0   : > { %1564 = vmatprep.subr.bf16.mxu1 %v2977_v32 }
 0x37d   : > { %v1326_v33 = vpop.f32.mrb[8].mxu1 }
 0x37e   : > { %v1328_v34 = vpop.f32.mrb[9].mxu1 }
 0x37f   : > { %v1329_v35 = vpop.f32.mrb[10].mxu1 }
 0x380   : > { %v1340_v36 = vpack.c.bf16 %v1329_v35, %v1326_v33  ;;  %v1331_v37 = vpop.f32.mrb[11].mxu1  ;;  %v1756_v33 = vld [vmem:[%s3782_s6] sm:$0x3] }
 0x381   : > { %v1765_v34 = vrot.slane %v1756_v33, %v988_v6 }
 0x382   : > { %v1368_v38 = vshll.u32 %v1340_v36, 16  ;;  %v1366_v44 = vshrl.u32 %v1340_v36, 16  ;;  %v1629_v45 = vrot.slane %v1340_v36, 1 }
 0x384   : > { %v1370_v40 = vrot.slane %v1368_v38, 1 }
 0x385   : > { %v1334_v39 = vpop.f32.mrb[12].mxu1 }
 0x386   : > { %v3504_v41 = vpack.c.bf16 %v1334_v39, %v1334_v39  ;;  %v1336_v42 = vpop.f32.mrb[13].mxu1  ;;  %v1371_v49 = vor.u32 %v1370_v40, %v1366_v44 }
 0x387   : > { %v1337_v43 = vpop.f32.mrb[14].mxu1 }
 0x388   : > { %v1373_v46 = vshll.u32 %v3504_v41, 16  ;;  %v1630_v47 = vrot.slane %v3504_v41, 1  ;;  %v1338_v48 = vpop.f32.mrb[15].mxu1  ;;  %v1377_v57 = vshrl.u32 %v3504_v41, 16 }
 0x38a   : > { %v1375_v50 = vrot.slane %v1373_v46, 1  ;;  %v1631_v52 = vsel %vm830_vm2, %v1629_v45, %v1630_v47 }
 0x38c   : > { %v1376_v54 = vsel %vm528_vm0, %v1371_v49, %v1375_v50  ;;  %v1379_v59 = vor.u32 %v1377_v57, %v1375_v50  ;;  %vm2236_vm0 = vcmask 39936  }
 0x38d   : > { %2595 = vmatmul.mubr.msk.bf16.vlgmr.msra.gmra.mrb[16].mxu1 %vm1435_vm8, %v1376_v54 }
 0x38e   : > { %1565 = vmatpush1.bf16.msra.mxu1 %v2975_v51  ;;  %1490 = vmatprep.mubr.bf16.mxu1 %v3095_v2 }
 0x38f   : > { %1566 = vmatprep.subr.bf16.mxu1 %v2980_v53 }
 0x392   : > { %1567 = vmatpush1.bf16.msra.mxu1 %v2978_v55 }
 0x393   : > { %1568 = vmatprep.subr.bf16.mxu1 %v2983_v56 }
 0x395   : > { %2596 = vmatmul.mubr.msk.bf16.gmra.mrb[20].mxu1 %vm1435_vm8, %v1379_v59 }
 0x396   : > { %1569 = vmatpush1.bf16.msra.mxu1 %v2981_v58  ;;  %1596 = vmatprep.mubr.bf16.mxu1 %v3095_v2 }
 0x397   : > { %1570 = vmatprep.subr.bf16.mxu1 %v2986_v60 }
 0x39a   : > { %1571 = vmatpush1.bf16.msra.mxu1 %v2984_v61 }
 0x39b   : > { %1572 = vmatprep.subr.bf16.mxu1 %v2989_v62 }
 0x39e   : > { %1573 = vmatpush1.bf16.msra.mxu1 %v2987_v0  ;;  %v1819_v0 = vsel %vm1817_vm9, 4294967295, %v3096_v18 }
 0x39f   : > { %2609 = vmatprep.subr.msk.bf16.mxu1 %vm1288_vm5, %v2608_v1 }
 0x3a2   : > { %1575 = vmatpush1.bf16.msra.mxu1 %v1559_v9 }
 0x3a3   : > { %1699 = vmatprep.subr.bf16.mxu1 %v2994_v10 }
 0x3a5   : > { %2610 = vmatmul.mubr.msk.bf16.vlgmr.msra.gmra.mrb[16].mxu1 %vm1435_vm8, %v1340_v36 }
 0x3a6   : > { %1700 = vmatpush1.bf16.msra.mxu1 %v2992_v11  ;;  %1606 = vmatprep.mubr.bf16.mxu1 %v3095_v2 }
 0x3a7   : > { %1701 = vmatprep.subr.bf16.mxu1 %v2997_v12 }
 0x3aa   : > { %1702 = vmatpush1.bf16.msra.mxu1 %v2995_v13  ;;  %v1820_v13 = vsel %vm1818_vm10, %v1819_v0, 0 }
 0x3ab   : > { %1703 = vmatprep.subr.bf16.mxu1 %v3000_v14 }
 0x3ad   : > { %2611 = vmatmul.mubr.msk.bf16.gmra.mrb[24].mxu1 %vm1435_vm8, %v3504_v41 }
 0x3ae   : > { %1704 = vmatpush1.bf16.msra.mxu1 %v2998_v15  ;;  %1731 = vmatprep.mubr.bf16.mxu1 %v3095_v2 }
 0x3af   : > { %1705 = vmatprep.subr.bf16.mxu1 %v3003_v7 }
 0x3b2   : > { %1706 = vmatpush1.bf16.msra.mxu1 %v3001_v16 }
 0x3b3   : > { %1707 = vmatprep.subr.bf16.mxu1 %v3006_v17 }
 0x3b6   : > { %1708 = vmatpush1.bf16.msra.mxu1 %v3004_v19  ;;  %v1808_v19 = vld [vmem:[%s3783_s7] sm:$0xf] }
 0x3b7   : > { %2635 = vmatprep.subr.msk.bf16.mxu1 %vm1288_vm5, %v2634_v20  ;;  %v3009_v20 = vld [vmem:[%s3784_s8] sm:$0xff]  }
 0x3ba   : > { %1710 = vmatpush1.bf16.msra.mxu1 %v1694_v22  ;;  %v3010_v22 = vld [vmem:[%s3784_s8 + $0x8] sm:$0xff]  }
 0x3bb   : > { %2751 = vmatprep.subr.bf16.mxu1 %v3098_v21 }
 0x3bd   : > { %2636 = vmatmul.mubr.msk.bf16.vlgmr.msra.gmra.mrb[16].mxu1 %vm1435_vm8, %v1631_v52 }
 0x3be   : > { %1741 = vmatprep.mubr.bf16.mxu1 %v3095_v2  ;;  %v1761_v2 = vrot.slane %v1756_v33, %v984_v4 }
 0x3c5   : > { %2637 = vmatmul.mubr.msk.bf16.gmra.mrb[28].mxu1 %vm1435_vm8, %v1630_v47 }
 0x3c6   : > { %2759 = vmatprep.mubr.msk.bf16.mxu1 %vm3099_vm12, %v3098_v21 }
 0x468   : > { %v1492_v23 = vpop.f32.mrb[20].mxu1 }
 0x469   : > { %v1494_v24 = vpop.f32.mrb[21].mxu1 }
 0x46a   : > { %v1496_v25 = vpop.f32.mrb[22].mxu1 }
 0x46b   : > { %v1497_v26 = vpop.f32.mrb[23].mxu1  ;;  %v3013_v25 = vld [vmem:[%s3784_s8 + $0x20] sm:$0xff]  }
 0x46c   : > { %v3014_v26 = vld [vmem:[%s3784_s8 + $0x28] sm:$0xff]  }
 0x480   : > { %v1608_v27 = vpop.f32.mrb[24].mxu1 }
 0x481   : > { %v1609_v28 = vadd.f32 %v1608_v27, %v1492_v23  ;;  %v1610_v29 = vpop.f32.mrb[25].mxu1  ;;  %v3011_v23 = vld [vmem:[%s3784_s8 + $0x10] sm:$0xff]  }
 0x482   : > { %v1611_v30 = vadd.f32 %v1610_v29, %v1494_v24  ;;  %v1612_v31 = vpop.f32.mrb[26].mxu1  ;;  %v3012_v24 = vld [vmem:[%s3784_s8 + $0x18] sm:$0xff]   ;;  %v3015_v27 = vld [vmem:[%s3784_s8 + $0x30] sm:$0xff]   ;;  %v3017_v29 = vld [vmem:[%s3785_s9] sm:$0xff]  }
 0x483   : > { %v1613_v32 = vpop.f32.mrb[27].mxu1  ;;  %2752 = vmatpush3.bf16.msra.mxu1 %v3017_v29  ;;  %v3018_v31 = vld [vmem:[%s3785_s9 + $0x8] sm:$0xff]  }
 0x484   : > { %2753 = vmatprep.subr.bf16.mxu1 %v3098_v21 }
 0x487   : > { %2754 = vmatpush3.bf16.msra.mxu1 %v3018_v31 }
 0x488   : > { %2755 = vmatprep.subr.bf16.mxu1 %v3098_v21 }
 0x490   : > { %v1733_v35 = vpop.f32.mrb[16].mxu1 }
 0x491   : > { %v1768_v36 = vadd.f32 %v1761_v2, %v1733_v35  ;;  %v1735_v37 = vpop.f32.mrb[17].mxu1  ;;  %v3020_v35 = vld [vmem:[%s3785_s9 + $0x10] sm:$0xff]  }
 0x492   : > { %v1769_v38 = vadd.f32 %v1765_v34, %v1735_v37  ;;  %v1737_v39 = vpop.f32.mrb[18].mxu1  ;;  %2756 = vmatpush3.bf16.msra.mxu1 %v3020_v35  ;;  %v2682_v35 = vld [vmem:[%s3790_s14] ss:$0 sm:$0xff] }
 0x493   : > { %v1774_v40 = vmax.f32 %v1768_v36, 0.0  ;;  %v1770_v41 = vadd.f32 %v1761_v2, %v1737_v39  ;;  %v1739_v42 = vpop.f32.mrb[19].mxu1  ;;  %2757 = vmatprep.subr.bf16.mxu1 %v3098_v21 }
 0x494   : > { %v1775_v43 = vmax.f32 %v1769_v38, 0.0  ;;  %v1771_v44 = vadd.f32 %v1765_v34, %v1739_v42 }
 0x495   : > { %v1776_v45 = vmax.f32 %v1770_v41, 0.0  ;;  %v1786_v47 = vrot.slane %v1774_v40, 1  ;;  %v3019_v41 = vld [vmem:[%s3785_s9 + $0x20] sm:$0xff]  }
 0x496   : > { %v1777_v46 = vmax.f32 %v1771_v44, 0.0  ;;  %v1789_v49 = vrot.slane %v1775_v43, 1  ;;  %v3022_v44 = vld [vmem:[%s3785_s9 + $0x18] sm:$0xff]  }
 0x497   : > { %v1787_v48 = vrot.slane %v1776_v45, 1  ;;  %2758 = vmatpush3.bf16.msra.mxu1 %v3022_v44 }
 0x498   : > { %v1790_v50 = vrot.slane %v1777_v46, 1  ;;  %v1743_v4 = vpop.f32.mrb[28].mxu1  ;;  %2775 = vmatprep.subr.bf16.mxu1 %v3098_v21 }
 0x499   : > { %v1788_v3 = vsel %vm830_vm2, %v1786_v47, %v1787_v48  ;;  %v1754_v6 = vadd.f32 %v1743_v4, %v1609_v28  ;;  %v1745_v51 = vpop.f32.mrb[29].mxu1  ;;  %v3016_v28 = vld [vmem:[%s3784_s8 + $0x38] sm:$0xff]  }
 0x49a   : > { %v1802_v52 = vmax.f32 %v1774_v40, %v1788_v3  ;;  %v1755_v53 = vadd.f32 %v1745_v51, %v1611_v30  ;;  %v1747_v54 = vpop.f32.mrb[30].mxu1  ;;  %v1791_v55 = vsel %vm830_vm2, %v1789_v49, %v1790_v50 }
 0x49b   : > { %v1772_v56 = vadd.f32 %v1761_v2, %v1754_v6  ;;  %v1748_v57 = vpop.f32.mrb[31].mxu1  ;;  %v1803_v58 = vmax.f32 %v1775_v43, %v1791_v55  ;;  %v3021_v43 = vld [vmem:[%s3785_s9 + $0x28] sm:$0xff]   ;;  %v3027_v55 = vld [vmem:[%s3785_s9 + $0x50] sm:$0xff]  }
 0x49c   : > { %v1773_v59 = vadd.f32 %v1765_v34, %v1755_v53  ;;  %v3026_v54 = vld [vmem:[%s3785_s9 + $0x48] sm:$0xff]  }
 0x49d   : > { %v1778_v60 = vmax.f32 %v1772_v56, 0.0  ;;  %v3028_v56 = vld [vmem:[%s3785_s9 + $0x58] sm:$0xff]  }
 0x49e   : > { %v1779_v61 = vmax.f32 %v1773_v59, 0.0 }
 0x49f   : > { %v1792_v62 = vrot.slane %v1778_v60, 1 }
 0x4a0   : > { %v1794_v63 = vrot.slane %v1779_v61, 1 }
 0x4a1   : > { %v1793_v1 = vsel %vm830_vm2, %v1787_v48, %v1792_v62  ;;  %v1806_v5 = vmax.f32 %v1778_v60, %v1792_v62 }
 0x4a2   : > { %v1807_v9 = vmax.f32 %v1779_v61, %v1794_v63  ;;  %v1795_v10 = vsel %vm830_vm2, %v1790_v50, %v1794_v63  ;;  %v1804_v11 = vmax.f32 %v1776_v45, %v1793_v1  ;;  %v3023_v45 = vld [vmem:[%s3785_s9 + $0x30] sm:$0xff]   ;;  %vm2404_vm2 = vcmask 254976  }
 0x4a3   : > { %v1805_v12 = vmax.f32 %v1777_v46, %v1795_v10  ;;  %v1811_v16 = vpack.c.bf16 %v1806_v5, %v1806_v5  ;;  %v3024_v46 = vld [vmem:[%s3785_s9 + $0x38] sm:$0xff]   ;;  %v2678_v10 = vld [vmem:[%s3786_s10] ss:$0 sm:$0xff] }
 0x4a4   : > { %v1812_v14 = vpack.c.bf16 %v1807_v9, %v1807_v9  ;;  %v1809_v15 = vpack.c.bf16 %v1804_v11, %v1802_v52  ;;  %v3025_v52 = vld [vmem:[%s3785_s9 + $0x40] sm:$0xff]  }
 0x4a5   : > { %v1810_v7 = vpack.c.bf16 %v1805_v12, %v1803_v58  ;;  %v1822_v8 = vand.u32 %v1820_v13, %v1811_v16  ;;  %v2241_v16 = vsel %vm1818_vm10, 4294967295, %v3096_v18  ;;  %v3029_v18 = vld [vmem:[%s3788_s12] sm:$0xff]  }
 0x4a6   : > { %v1825_v17 = vand.u32 %v1820_v13, %v1812_v14 }
 0x4a7   : > { %1827 = vmatprep.subr.bf16.mxu0 %v1810_v7 }
 0x4a8   : > { %1828 = vmatpush1.bf16.msra.mxu0 %v1809_v15 }
 0x4a9   : > { %1829 = vmatprep.subr.bf16.mxu0 %v1825_v17 }
 0x4ac   : > { %1830 = vmatpush1.bf16.msra.mxu0 %v1822_v8 }
 0x4ad   : > { %2719 = vmatprep.subr.bf16.mxu0 %v3098_v21 }
 0x4af   : > { %2638 = vmatmul.mubr.msk.bf16.vlgmr.msra.gmra.mrb[12].mxu0 %vm1813_vm11, %v1808_v19  ;;  %v2242_v19 = vsel %vm2240_vm15, %v2241_v16, 0 }
 0x4b0   : > { %2720 = vmatpush3.bf16.msra.mxu0 %v3009_v20  ;;  %2735 = vmatprep.mubr.msk.bf16.mxu0 %vm3099_vm12, %v3098_v21 }
 0x4b1   : > { %2721 = vmatprep.subr.bf16.mxu0 %v3098_v21 }
 0x4b4   : > { %2722 = vmatpush3.bf16.msra.mxu0 %v3010_v22 }
 0x4b5   : > { %2723 = vmatprep.subr.bf16.mxu0 %v3098_v21 }
 0x4b8   : > { %2724 = vmatpush3.bf16.msra.mxu0 %v3011_v23  ;;  %v2234_v23 = vld [vmem:[%s3787_s11] sm:$0x1] }
 0x4b9   : > { %2725 = vmatprep.subr.bf16.mxu0 %v3098_v21 }
 0x4bc   : > { %2726 = vmatpush3.bf16.msra.mxu0 %v3012_v24 }
 0x4bd   : > { %2727 = vmatprep.subr.bf16.mxu0 %v3098_v21 }
 0x4c0   : > { %2728 = vmatpush3.bf16.msra.mxu0 %v3013_v25 }
 0x4c1   : > { %2729 = vmatprep.subr.bf16.mxu0 %v3098_v21 }
 0x4c4   : > { %2730 = vmatpush3.bf16.msra.mxu0 %v3014_v26 }
 0x4c5   : > { %2731 = vmatprep.subr.bf16.mxu0 %v3098_v21 }
 0x4c8   : > { %2732 = vmatpush3.bf16.msra.mxu0 %v3015_v27 }
 0x4c9   : > { %2733 = vmatprep.subr.bf16.mxu0 %v3098_v21 }
 0x4cc   : > { %2734 = vmatpush3.bf16.msra.mxu0 %v3016_v28 }
 0x4cd   : > { %2739 = vmatprep.subr.bf16.mxu0 %v3098_v21 }
 0x582   : > { %v1861_v30 = vpop.f32.mrb[12].mxu0 }
 0x583   : > { %v1863_v32 = vpop.f32.mrb[13].mxu0 }
 0x584   : > { %v2886_v33 = vpack.i.bf16 %v1863_v32, %v1861_v30  ;;  %v1865_v2 = vpop.f32.mrb[14].mxu0 }
 0x585   : > { %v1866_v34 = vpop.f32.mrb[15].mxu0 }
 0x586   : > { %2887 = vrot.lane.b32.xlu1 %v2886_v33, %s3100_s17 }
 0x5f8   : > { %v2888_v36 = vpop.permute.xlu1 %2887 }
 0x5f9   : > { %v2890_v37 = vunpack.i.h.bf16 %v2888_v36  ;;  %v2889_v38 = vunpack.i.l.bf16 %v2888_v36 }
 0x5fb   : > { %v1875_v39 = vsel %vm1874_vm13, %v2889_v38, %v2890_v37 }
 0x5fc   : > { %v1877_v40 = vmax.f32 %v1861_v30, %v1875_v39 }
 0x5fe   : > { %v1878_v42 = vpack.c.bf16 %v1877_v40, %v1877_v40 }
 0x600   : > { %2736 = vmatmul.mubr.bf16.vlgmr.msra.gmra.mrb[16].mxu0 %v1878_v42 }
 0x601   : > { %2740 = vmatpush3.bf16.msra.mxu0 %v3019_v41  ;;  %2747 = vmatprep.mubr.msk.bf16.mxu0 %vm3099_vm12, %v3098_v21 }
 0x602   : > { %2741 = vmatprep.subr.bf16.mxu0 %v3098_v21 }
 0x605   : > { %2742 = vmatpush3.bf16.msra.mxu0 %v3021_v43 }
 0x606   : > { %2743 = vmatprep.subr.bf16.mxu0 %v3098_v21 }
 0x609   : > { %2744 = vmatpush3.bf16.msra.mxu0 %v3023_v45 }
 0x60a   : > { %2745 = vmatprep.subr.bf16.mxu0 %v3098_v21 }
 0x60d   : > { %2746 = vmatpush3.bf16.msra.mxu0 %v3024_v46 }
 0x60e   : > { %2763 = vmatprep.subr.bf16.mxu0 %v3098_v21 }
 0x6d3   : > { %v1977_v47 = vpop.f32.mrb[16].mxu0 }
 0x6d4   : > { %v1983_v48 = vpack.c.bf16 %v1977_v47, %v1977_v47  ;;  %v2737_v49 = vpop.f32.mrb[17].mxu0 }
 0x6d5   : > { %v1980_v50 = vpop.f32.mrb[18].mxu0 }
 0x6d6   : > { %v2004_v4 = vshll.u32 %v1983_v48, 16  ;;  %v2738_v3 = vpop.f32.mrb[19].mxu0  ;;  %2760 = vmatmul.mubr.msk.bf16.vlgmr.msra.gmra.mrb[32].mxu1 %vm2032_vm14, %v1983_v48  ;;  %v2002_v6 = vshrl.u32 %v1983_v48, 16  ;;  %v2152_v57 = vrot.slane %v1983_v48, 1 }
 0x6d7   : > { %2777 = vmatprep.mubr.msk.bf16.mxu1 %vm3099_vm12, %v3098_v21 }
 0x6d8   : > { %v2006_v51 = vrot.slane %v2004_v4, 1 }
 0x6da   : > { %v2007_v53 = vor.u32 %v2006_v51, %v2002_v6 }
 0x6dc   : > { %2748 = vmatmul.mubr.msk.bf16.vlgmr.msra.gmra.mrb[20].mxu0 %vm2032_vm14, %v2007_v53 }
 0x6dd   : > { %2764 = vmatpush3.bf16.msra.mxu0 %v3025_v52  ;;  %2771 = vmatprep.mubr.msk.bf16.mxu0 %vm3099_vm12, %v3098_v21 }
 0x6de   : > { %2765 = vmatprep.subr.bf16.mxu0 %v3098_v21 }
 0x6e1   : > { %2766 = vmatpush3.bf16.msra.mxu0 %v3026_v54 }
 0x6e2   : > { %2767 = vmatprep.subr.bf16.mxu0 %v3098_v21 }
 0x6e5   : > { %2768 = vmatpush3.bf16.msra.mxu0 %v3027_v55 }
 0x6e6   : > { %2769 = vmatprep.subr.bf16.mxu0 %v3098_v21 }
 0x6e9   : > { %2770 = vmatpush3.bf16.msra.mxu0 %v3028_v56 }
 0x6ea   : > { %2787 = vmatprep.subr.bf16.mxu0 %v3098_v21 }
 0x6ec   : > { %2772 = vmatmul.mubr.msk.bf16.vlgmr.msra.gmra.mrb[24].mxu0 %vm2032_vm14, %v2152_v57 }
 0x6ed   : > { %2789 = vmatprep.mubr.msk.bf16.mxu0 %vm3099_vm12, %v3098_v21 }
 0x7a9   : > { %v2136_v58 = vpop.f32.mrb[32].mxu1 }
 0x7aa   : > { %v2761_v59 = vpop.f32.mrb[33].mxu1 }
 0x7ab   : > { %v2139_v60 = vpop.f32.mrb[34].mxu1 }
 0x7ac   : > { %v2762_v61 = vpop.f32.mrb[35].mxu1 }
 0x7af   : > { %v2070_v62 = vpop.f32.mrb[20].mxu0 }
 0x7b0   : > { %v2137_v63 = vadd.f32 %v2136_v58, %v2070_v62  ;;  %v2749_v0 = vpop.f32.mrb[21].mxu0 }
 0x7b1   : > { %v2073_v1 = vpop.f32.mrb[22].mxu0 }
 0x7b2   : > { %v2750_v5 = vpop.f32.mrb[23].mxu0 }
 0x7bf   : > { %v2214_v9 = vpop.f32.mrb[24].mxu0 }
 0x7c0   : > { %v2220_v11 = vadd.f32 %v2214_v9, %v2137_v63  ;;  %v2773_v12 = vpop.f32.mrb[25].mxu0 }
 0x7c1   : > { %v2217_v13 = vpop.f32.mrb[26].mxu0 }
 0x7c2   : > { %v2228_v14 = vadd.f32 %v2678_v10, %v2220_v11  ;;  %v2774_v15 = vpop.f32.mrb[27].mxu0 }
 0x7c4   : > { %v2229_v7 = vmax.f32 %v2228_v14, 0.0 }
 0x7c6   : > { %v2231_v17 = vrot.slane %v2229_v7, 1 }
 0x7c8   : > { %v2233_v8 = vmax.f32 %v2229_v7, %v2231_v17 }
 0x7ca   : > { %v2235_v20 = vpack.c.bf16 %v2233_v8, %v2233_v8 }
 0x7cc   : > { %v2244_v22 = vand.u32 %v2242_v19, %v2235_v20 }
 0x7ce   : > { %2776 = vmatpush3.bf16.msra.mxu1 %v2244_v22 }
 0x7cf   : > { %2781 = vmatprep.subr.bf16.mxu1 %v3098_v21 }
 0x7d1   : > { %2778 = vmatmul.mubr.msk.bf16.vlgmr.msra.gmra.mrb[36].mxu1 %vm2236_vm0, %v2234_v23 }
 0x7d2   : > { %2783 = vmatprep.mubr.msk.bf16.mxu1 %vm3099_vm12, %v3098_v21  ;;  %2782 = vmatpush3.bf16.msra.mxu1 %v3029_v18  ;;  %v3030_v21 = vld [vmem:[%s3789_s13] sm:$0xff]  }
 0x7d3   : > { %2788 = vmatpush3.bf16.msra.mxu0 %v3030_v21 }
 0x8a4   : > { %v2280_v24 = vpop.f32.mrb[36].mxu1 }
 0x8a5   : > { %2287 = vrot.lane.b32.xlu0 %v2280_v24, %s3100_s17  ;;  %v2779_v25 = vpop.f32.mrb[37].mxu1  ;;  %s485_s17 = sand.u32 1, %s3085_s19  }
 0x8a6   : > { %v2283_v26 = vpop.f32.mrb[38].mxu1  ;;  %s2483_s20 = sshll.u32 %s485_s17, 1  ;;  %s2407_s22 = scalar_lea.sflag [#allocation3], %s485_s17 }
 0x8a7   : > { %v2780_v27 = vpop.f32.mrb[39].mxu1  ;;  %s487_s27 = scalar_lea.vmem [#allocation2], %s2483_s20  ;;  %s3035_s20 = sshll.u32 %s3101_s26, 4  ;;  %s3036_s20 = int_to_ptr.vmem [resolvable:$false] %s3035_s20 }
 0x8a8   : > { %s2420_s29 = sshll.u32 %s487_s27, 4  ;;  %s3037_s24 = scalar_lea.vmem %s3036_s20, 64  ;;  %s3736_s29 = int_to_ptr.vmem [resolvable:$true] %s2420_s29 }
 0x8a9   : > { %s3031_s25 = scalar_lea.vmem %s3736_s29, 32  ;;  %p3038_p0 = scmp.lt.s32.totalorder %s3736_s29, %s3036_s20 }
 0x8aa   : > { %p3032_p11 = scmp.ne.s32.totalorder %s3736_s29, %s3031_s25  ;;  %p3039_p1 = scmp.lt.s32.totalorder %s3037_s24, %s3031_s25 }
 0x8ac   : > { %p3033_p12 = pnand %p3032_p11, %p3220_p5  ;;  %p3040_p2 = por %p3039_p1, %p3038_p0 }
 0x8ae   : > { %p3034_p13 = pneg %p3033_p12 }
 0x8b0   : > { %p3041_p3 = pnand %p3040_p2, %p3034_p13 }
 0x917   : > { %v2288_v28 = vpop.permute.xlu0 %2287 }
 0x918   : > { %v2290_v29 = vmax.f32 %v2280_v24, %v2288_v28 }
 0x91a   : > { %v2291_v30 = vpack.c.bf16 %v2290_v29, %v2290_v29 }
 0x91c   : > { %2784 = vmatmul.mubr.msk.bf16.vlgmr.msra.gmra.mrb[40].mxu1 %vm2300_vm1, %v2291_v30 }
 0x9ef   : > { %v2338_v31 = vpop.f32.mrb[40].mxu1 }
 0x9f0   : > { %v2344_v32 = vpack.c.bf16 %v2338_v31, %v2338_v31  ;;  %v2785_v33 = vpop.f32.mrb[41].mxu1 }
 0x9f1   : > { %v2341_v2 = vpop.f32.mrb[42].mxu1 }
 0x9f2   : > { %v2786_v34 = vpop.f32.mrb[43].mxu1  ;;  %2790 = vmatmul.mubr.msk.bf16.vlgmr.msra.gmra.mrb[28].mxu0 %vm2300_vm1, %v2344_v32 }
 0xac5   : > { %v2397_v36 = vpop.f32.mrb[28].mxu0 }
 0xac6   : > { %v2398_v37 = vadd.f32 %v2682_v35, %v2397_v36  ;;  %v2791_v38 = vpop.f32.mrb[29].mxu0 }
 0xac7   : > { %v2400_v39 = vpop.f32.mrb[30].mxu0 }
 0xac8   : > { %v2403_v40 = vmax.f32 %v2398_v37, 0.0  ;;  %v2792_v41 = vpop.f32.mrb[31].mxu0 }
 0xaca   : > { %2405 = vst.msk [vmem:[%s487_s27] sm:$0x3] %vm2404_vm2, %v2403_v40 }
 0xacb   : > { %3044 = shalt.err (!%p3041_p3)
}
 0xacc   : > { %s3045_s17 = scalar_lea.hbm %s3734_s18, 32  ;;  %s3049_s27 = scalar_lea.hbm %s3808_s23, 64 }
 0xacd   : > { %p3046_p4 = scmp.ne.s32.totalorder %s3734_s18, %s3045_s17  ;;  %p3050_p9 = scmp.lt.u32.totalorder %s3734_s18, %s3808_s23 }
 0xace   : > { %p3051_p10 = scmp.lt.u32.totalorder %s3049_s27, %s3045_s17  ;;  %p3053_p12 = scmp.lt.u32.totalorder %s3045_s17, %s3734_s18 }
 0xacf   : > { %p3047_p7 = pnand %p3046_p4, %p3220_p5 }
 0xad0   : > { %p3052_p11 = por %p3051_p10, %p3050_p9 }
 0xad1   : > { %p3048_p8 = pneg %p3047_p7 }
 0xad2   : > { %p3054_p13 = por %p3053_p12, %p3052_p11 }
 0xad4   : > { %p3055_p0 = pnand %p3054_p13, %p3048_p8 }
 0xad6   : > { %3058 = shalt.err (!%p3055_p0)
}
 0xad7   : > { %2826 = dma.vmem_to_hbm [thread:$0]  (%p3220_p5), %s3736_s29, 32, %s3734_s18, %s2407_s22  }
 0xad8 PF: > { %s3809_s25 = sld [smem:[#allocation7_spill]]  ;;  %s3810_s26 = sld [smem:[#allocation5_spill]] }
 0xade   : > { %p2832_p1 = scmp.ge.s32.totalorder %s3809_s25, 2  ;;  %s2432_s24 = sand.u32 1, %s3810_s26  }
 0xadf   : > { %s2433_s21 = scalar_lea.sflag [#allocation3], %s2432_s24 }
 0xae0   : > { %p2829_p2 = pnand %p2832_p1, %p3224_p6 }
 0xae2   : > { %3076 = dma.done.wait (!%p2829_p2), %s2433_s21, 32  }
 0xae3   : > { %3078 = vsyncadd (!%p2829_p2), %s2433_s21, 4294967264  ;;  %s3812_s21 = sld [smem:[#allocation8_spill]]  ;;  %s3813_s17 = sld [smem:[#allocation6_spill]] }
 0xae4   : > { %s3814_s20 = sld [smem:[#allocation9_spill]]  ;;  %s3815_s18 = smov %s3085_s19 }
 0xae9   : > { %p25_p3 = scmp.ge.s32.totalorder %s3812_s21, 4   ;;  %s3816_s19 = smov %s3813_s17 }
 0xaeb   :  { %27 = sbr.rel (!%p25_p3) target bundleno = 5 (0x5), region = 121 }
 0xaf2   :  { %2438 = vsyncpa [#allocation3], 1 }
 0xaf3   :  { %2440 = vsyncpa [#allocation3 + $0x1], 1 }

</bundles_post_ra>
